<compile_context>
chip_gen: v7x
topology: tpu7x:2x2x1
jax: 0.10.0
libtpu: 0.0.40
codegen_flags: <defaults>
</compile_context>

<pallas_src>
import math
import functools

import jax
import jax.numpy as jnp
from jax import lax
from jax.experimental import pallas as pl
from jax.experimental.pallas import tpu as pltpu


def _mha_block_kernel(flags_ref, xq_ref, k_ref, v_ref, bias_ref, wqt_ref,
                      wot_ref, bo_ref, out_ref,
                      qs_ref, acc_ref, m_ref, l_ref, *, heads, d_k, n_q, n_kv):
    """One (batch, q-tile, kv-tile) step of the fused transformer block.

    flags_ref: (B*n_q*n_kv,) int32 SMEM  1 if the block has any unmasked entry
    xq_ref   : (1, TQ, H)   bf16   rows used for queries
    k_ref    : (1, TK, H)   bf16   pre-projected keys   (x @ Wk^T)
    v_ref    : (1, TK, H)   bf16   pre-projected values (x @ Wv^T)
    bias_ref : (1, TQ, TK)  bf16   additive mask bias (0 keep / -1e9 masked)
    wqt_ref  : (H, H)       bf16   Wq^T (x @ W layout, resident)
    wot_ref  : (H, H)       bf16   Wo^T (resident)
    bo_ref   : (1, H)       f32    output-linear bias
    out_ref  : (1, TQ, H)          written on the last kv step
    qs_ref   : (TQ, H)      bf16   scaled Q (scratch, persists over kv steps)
    acc_ref  : (TQ, H)      f32    online-softmax numerator accumulator
    m_ref    : (TQ, heads)  f32    running row max per head
    l_ref    : (TQ, heads)  f32    running row sum per head
    """
    b = pl.program_id(0)
    qi = pl.program_id(1)
    ki = pl.program_id(2)
    last_kv = pl.num_programs(2) - 1
    scale = 1.0 / math.sqrt(d_k)

    @pl.when(ki == 0)
    def _init():
        # Q projection once per (batch, q-tile); 1/sqrt(d_k) folded into q.
        q = jnp.dot(xq_ref[0], wqt_ref[...], preferred_element_type=jnp.float32)
        qs_ref[...] = (q * scale).astype(qs_ref.dtype)
        m_ref[...] = jnp.full(m_ref.shape, -jnp.inf, dtype=m_ref.dtype)
        l_ref[...] = jnp.zeros(l_ref.shape, dtype=l_ref.dtype)
        acc_ref[...] = jnp.zeros(acc_ref.shape, dtype=acc_ref.dtype)

    # Block-level mask skip: fully-masked (qi, ki) tiles contribute exactly 0
    # probability mass (exp(-1e9 - m) underflows), so skipping them is exact.
    blk_flag = flags_ref[(b * n_q + qi) * n_kv + ki]

    @pl.when(blk_flag != 0)
    def _attend():
        bias = bias_ref[0].astype(jnp.float32)                          # (TQ, TK)
        q_all = qs_ref[...]                                             # (TQ, H) bf16

        # Static (unrolled) head loop; heads live in disjoint lane slices.  K/V
        # head slices are loaded from the input refs per head (bounded loads,
        # no full (TK, H) live values across the loop).
        for h in range(heads):
            sl = slice(h * d_k, (h + 1) * d_k)
            k_h = k_ref[0, :, sl]                                       # (TK, d_k)
            v_h = v_ref[0, :, sl]                                       # (TK, d_k)

            # q_h @ k_h^T without materializing a transpose.
            s = lax.dot_general(q_all[:, sl], k_h,
                                dimension_numbers=(((1,), (1,)), ((), ())),
                                preferred_element_type=jnp.float32) + bias

            m_prev = m_ref[:, h:h + 1]                                  # (TQ, 1)
            l_prev = l_ref[:, h:h + 1]
            m_new = jnp.maximum(m_prev, jnp.max(s, axis=-1, keepdims=True))
            alpha = jnp.exp(m_prev - m_new)
            p = jnp.exp(s - m_new)                                      # (TQ, TK)

            l_ref[:, h:h + 1] = alpha * l_prev + jnp.sum(p, axis=-1, keepdims=True)
            m_ref[:, h:h + 1] = m_new
            acc_ref[:, sl] = alpha * acc_ref[:, sl] + jnp.dot(
                p.astype(v_h.dtype), v_h, preferred_element_type=jnp.float32)

    @pl.when(ki == last_kv)
    def _finalize():
        # Normalize each head's slice (EUP reciprocal).
        for h in range(heads):
            sl = slice(h * d_k, (h + 1) * d_k)
            acc_ref[:, sl] = acc_ref[:, sl] * pl.reciprocal(
                l_ref[:, h:h + 1], approx=True)
        ctx = acc_ref[...].astype(wot_ref.dtype)                        # (TQ, H) bf16
        out = jnp.dot(ctx, wot_ref[...],
                      preferred_element_type=jnp.float32) + bo_ref[...].astype(jnp.float32)
        out_ref[0] = out.astype(out_ref.dtype)


def _pick_vmem_limit():
    """~75% of physical per-core VMEM, clamped to [32 MiB, 128 MiB]."""
    try:
        cap = pltpu.get_tpu_info().vmem_capacity_bytes
        lim = (int(cap) * 3) // 4
    except Exception:
        lim = 48 * 1024 * 1024   # safe on v7x (64 MiB physical)
    return max(32 * 1024 * 1024, min(lim, 128 * 1024 * 1024))


def transformer_block_simple(x, mask, params, heads, *, tq=None, tk=None,
                             compute_dtype=jnp.bfloat16, vmem_limit_bytes=None):
    """x: (B, L, H) f32, mask: (B, 1, L, L) int (0 = masked, nonzero = keep)."""
    B, L, h_dim = x.shape
    assert h_dim % heads == 0, "h_dim must be divisible by heads"
    d_k = h_dim // heads

    tq = min(L, 256) if tq is None else tq
    tk = min(L, 256) if tk is None else tk
    assert L % tq == 0 and L % tk == 0, "L must be divisible by the q/kv tiles"

    wq, wk, wv, wo, bo = params
    cd = compute_dtype

    # bf16 activations/weights at the boundary; pre-transpose (out,in)->(in,out)
    # so every matmul is plain x @ W (no in-kernel transposes).
    x_c = x.astype(cd)
    wq_t = wq.T.astype(cd)
    wo_t = wo.T.astype(cd)
    bo2 = bo.reshape(1, h_dim).astype(jnp.float32)

    # K / V projections once per token in the wrapper (f32 accumulate, bf16
    # storage) — removes the n_q-fold recompute inside the kernel and the
    # resident Wk^T / Wv^T weight blocks.
    k_proj = jnp.einsum('bld,de->ble', x_c, wk.T.astype(cd),
                        preferred_element_type=jnp.float32).astype(cd)
    v_proj = jnp.einsum('bld,de->ble', x_c, wv.T.astype(cd),
                        preferred_element_type=jnp.float32).astype(cd)

    # Additive mask bias (reused across heads).  Keep at -1e9 (NOT -inf) so
    # alpha = exp(m_prev - m_new) never produces NaN on partially masked tiles.
    keep = (mask[:, 0] != 0)                                            # (B, L, L)
    bias = jnp.where(keep, jnp.float32(0.0), jnp.float32(-1e9)).astype(cd)

    n_q, n_kv = L // tq, L // tk

    # Per-block "any unmasked" flag, prefetched into SMEM (flattened 1D to
    # avoid SMEM 2D padding blowup).
    blk_any = keep.reshape(B, n_q, tq, n_kv, tk).any(axis=(2, 4))       # (B,n_q,n_kv)
    flags = blk_any.astype(jnp.int32).reshape(-1)

    if vmem_limit_bytes is None:
        vmem_limit_bytes = _pick_vmem_limit()

    kernel = functools.partial(_mha_block_kernel, heads=heads, d_k=d_k,
                               n_q=n_q, n_kv=n_kv)

    grid_spec = pltpu.PrefetchScalarGridSpec(
        num_scalar_prefetch=1,
        grid=(B, n_q, n_kv),
        in_specs=[
            pl.BlockSpec((1, tq, h_dim), lambda b, qi, ki, fl: (b, qi, 0)),   # x (queries)
            pl.BlockSpec((1, tk, h_dim), lambda b, qi, ki, fl: (b, ki, 0)),   # K = x @ Wk^T
            pl.BlockSpec((1, tk, h_dim), lambda b, qi, ki, fl: (b, ki, 0)),   # V = x @ Wv^T
            pl.BlockSpec((1, tq, tk),    lambda b, qi, ki, fl: (b, qi, ki)),  # mask bias
            pl.BlockSpec((h_dim, h_dim), lambda b, qi, ki, fl: (0, 0)),       # Wq^T (resident)
            pl.BlockSpec((h_dim, h_dim), lambda b, qi, ki, fl: (0, 0)),       # Wo^T (resident)
            pl.BlockSpec((1, h_dim),     lambda b, qi, ki, fl: (0, 0)),       # bo
        ],
        out_specs=pl.BlockSpec((1, tq, h_dim), lambda b, qi, ki, fl: (b, qi, 0)),
        scratch_shapes=[
            pltpu.VMEM((tq, h_dim), cd),           # scaled Q
            pltpu.VMEM((tq, h_dim), jnp.float32),  # numerator accumulator
            pltpu.VMEM((tq, heads), jnp.float32),  # running max (per head)
            pltpu.VMEM((tq, heads), jnp.float32),  # running sum (per head)
        ],
    )

    return pl.pallas_call(
        kernel,
        out_shape=jax.ShapeDtypeStruct((B, L, h_dim), x.dtype),
        grid_spec=grid_spec,
        compiler_params=pltpu.CompilerParams(
            dimension_semantics=("parallel", "parallel", "arbitrary"),
            vmem_limit_bytes=vmem_limit_bytes,
        ),
    )(flags, x_c, k_proj, v_proj, bias, wq_t, wo_t, bo2)


def _reference(x, mask, params, heads, compute_dtype=jnp.bfloat16):
    """Pure-JAX reference mirroring the PyTorch forward (dropout = identity).

    Inputs/weights are rounded to the kernel's compute dtype so the comparison
    tolerance only has to absorb internal bf16 rounding of intermediates.
    """
    wq, wk, wv, wo, bo = params
    f32 = jnp.float32
    rd = lambda a: a.astype(compute_dtype).astype(f32)
    x, wq, wk, wv, wo = rd(x), rd(wq), rd(wk), rd(wv), rd(wo)

    B, L, h_dim = x.shape
    d_k = h_dim // heads

    def proj(x, w):
        return jnp.einsum('bld,ed->ble', x, w)

    q = proj(x, wq).reshape(B, L, heads, d_k).transpose(0, 2, 1, 3)
    k = proj(x, wk).reshape(B, L, heads, d_k).transpose(0, 2, 1, 3)
    v = proj(x, wv).reshape(B, L, heads, d_k).transpose(0, 2, 1, 3)

    scores = jnp.einsum('bhld,bhmd->bhlm', q, k) / math.sqrt(d_k)
    scores = jnp.where(mask == 0, -1e9, scores)
    p = jax.nn.softmax(scores, axis=-1)
    ctx = jnp.einsum('bhlm,bhmd->bhld', p, v)
    ctx = ctx.transpose(0, 2, 1, 3).reshape(B, L, h_dim)
    return jnp.einsum('bld,ed->ble', ctx, wo) + bo.astype(f32)


def _make_inputs(key, B, L, h_dim):
    kx, kq, kk, kv, ko, kb = jax.random.split(key, 6)
    x = jax.random.normal(kx, (B, L, h_dim), dtype=jnp.float32)
    causal = jnp.tril(jnp.ones((L, L), dtype=jnp.int32))
    mask = jnp.broadcast_to(causal[None, None], (B, 1, L, L))
    bound = 1.0 / math.sqrt(h_dim)
    wq = jax.random.uniform(kq, (h_dim, h_dim), jnp.float32, -bound, bound)
    wk = jax.random.uniform(kk, (h_dim, h_dim), jnp.float32, -bound, bound)
    wv = jax.random.uniform(kv, (h_dim, h_dim), jnp.float32, -bound, bound)
    wo = jax.random.uniform(ko, (h_dim, h_dim), jnp.float32, -bound, bound)
    bo = jax.random.uniform(kb, (h_dim,), jnp.float32, -bound, bound)
    return x, mask, (wq, wk, wv, wo, bo)


if __name__ == "__main__":
    HEADS = 4
    key = jax.random.PRNGKey(0)
    k1, k2 = jax.random.split(key)

    # Small single-block case (matches the module's typical toy shapes).
    B, L, H_DIM = 2, 8, 32
    x, mask, params = _make_inputs(k1, B, L, H_DIM)
    out = jax.block_until_ready(transformer_block_simple(x, mask, params, HEADS))
    ref = _reference(x, mask, params, HEADS)
    assert out.shape == (B, L, H_DIM)
    assert jnp.allclose(out, ref, atol=2e-2, rtol=2e-2), "mismatch vs reference (small)"

    # Multi-block case exercising the causal block-skip path (tq=tk=128).
    B2, L2 = 2, 256
    x2, mask2, params2 = _make_inputs(k2, B2, L2, H_DIM)
    out2 = jax.block_until_ready(
        transformer_block_simple(x2, mask2, params2, HEADS, tq=128, tk=128))
    ref2 = _reference(x2, mask2, params2, HEADS)
    assert out2.shape == (B2, L2, H_DIM)
    assert jnp.allclose(out2, ref2, atol=2e-2, rtol=2e-2), "mismatch vs reference (tiled)"

    print("KERNEL_OK")
</pallas_src>

<mosaic_0001>
module attributes {stable_mosaic.version = 11 : i64} {
  func.func @_mha_block_kernel(%arg0: i32, %arg1: i32, %arg2: i32, %arg3: memref<2xi32, #tpu.memory_space<smem>>, %arg4: memref<1x8x32xbf16, #tpu.memory_space<vmem>>, %arg5: memref<1x8x32xbf16, #tpu.memory_space<vmem>>, %arg6: memref<1x8x32xbf16, #tpu.memory_space<vmem>>, %arg7: memref<1x8x8xbf16, #tpu.memory_space<vmem>>, %arg8: memref<32x32xbf16, #tpu.memory_space<vmem>>, %arg9: memref<32x32xbf16, #tpu.memory_space<vmem>>, %arg10: memref<1x32xf32, #tpu.memory_space<vmem>>, %arg11: memref<1x8x32xf32, #tpu.memory_space<vmem>>, %arg12: memref<8x32xbf16, #tpu.memory_space<vmem>>, %arg13: memref<8x32xf32, #tpu.memory_space<vmem>>, %arg14: memref<8x4xf32, #tpu.memory_space<vmem>>, %arg15: memref<8x4xf32, #tpu.memory_space<vmem>>) attributes {dimension_semantics = [#tpu.dimension_semantics<parallel>, #tpu.dimension_semantics<parallel>, #tpu.dimension_semantics<arbitrary>], iteration_bounds = array<i64: 2, 1, 1>, scalar_prefetch = 1 : i64, scratch_operands = 4 : i64, tpu.core_type = #tpu.core_type<tc>, window_params = [{transform_indices = @transform_0, window_bounds = array<i64: 1, 8, 32>}, {transform_indices = @transform_1, window_bounds = array<i64: 1, 8, 32>}, {transform_indices = @transform_2, window_bounds = array<i64: 1, 8, 32>}, {transform_indices = @transform_3, window_bounds = array<i64: 1, 8, 8>}, {pipeline_mode = #tpu.pipeline_mode<synchronous>, transform_indices = @transform_4, window_bounds = array<i64: 32, 32>}, {pipeline_mode = #tpu.pipeline_mode<synchronous>, transform_indices = @transform_5, window_bounds = array<i64: 32, 32>}, {pipeline_mode = #tpu.pipeline_mode<synchronous>, transform_indices = @transform_6, window_bounds = array<i64: 1, 32>}, {transform_indices = @transform_7, window_bounds = array<i64: 1, 8, 32>}]} {
    %c0_i32 = arith.constant 0 : i32
    %0 = arith.cmpi eq, %arg2, %c0_i32 : i32
    %1 = arith.extui %0 : i1 to i32
    %c0_i32_0 = arith.constant 0 : i32
    %2 = arith.cmpi ne, %1, %c0_i32_0 : i32
    scf.if %2 {
      %c0 = arith.constant 0 : index
      %c0_6 = arith.constant 0 : index
      %c0_7 = arith.constant 0 : index
      %15 = vector.load %arg4[%c0, %c0_6, %c0_7] : memref<1x8x32xbf16, #tpu.memory_space<vmem>>, vector<1x8x32xbf16>
      %16 = vector.shape_cast %15 : vector<1x8x32xbf16> to vector<8x32xbf16>
      %c0_8 = arith.constant 0 : index
      %c0_9 = arith.constant 0 : index
      %17 = vector.load %arg8[%c0_8, %c0_9] : memref<32x32xbf16, #tpu.memory_space<vmem>>, vector<32x32xbf16>
      %cst = arith.constant dense<0.000000e+00> : vector<8x32xf32>
      %18 = tpu.matmul %16, %17, %cst {dimension_numbers = #tpu.dot_dimension_numbers<[1], [0], [0], [1], [0, 0, 1, 1], [], []>} : vector<8x32xbf16>, vector<32x32xbf16>, vector<8x32xf32> -> vector<8x32xf32>
      %cst_10 = arith.constant 0.353553385 : f32
      %19 = vector.broadcast %cst_10 : f32 to vector<8x32xf32>
      %20 = arith.mulf %18, %19 : vector<8x32xf32>
      %21 = arith.truncf %20 : vector<8x32xf32> to vector<8x32xbf16>
      %c0_11 = arith.constant 0 : index
      %c0_12 = arith.constant 0 : index
      %22 = vector.load %arg12[%c0_11, %c0_12] : memref<8x32xbf16, #tpu.memory_space<vmem>>, vector<8x32xbf16>
      tpu.vector_store %arg12[%c0_11, %c0_12], %21 {strides = array<i32>} : memref<8x32xbf16, #tpu.memory_space<vmem>>, vector<8x32xbf16>,
      %cst_13 = arith.constant 0xFF800000 : f32
      %23 = vector.broadcast %cst_13 : f32 to vector<8x4xf32>
      %c0_14 = arith.constant 0 : index
      %c0_15 = arith.constant 0 : index
      %24 = vector.load %arg14[%c0_14, %c0_15] : memref<8x4xf32, #tpu.memory_space<vmem>>, vector<8x4xf32>
      tpu.vector_store %arg14[%c0_14, %c0_15], %23 {strides = array<i32>} : memref<8x4xf32, #tpu.memory_space<vmem>>, vector<8x4xf32>,
      %cst_16 = arith.constant 0.000000e+00 : f32
      %25 = vector.broadcast %cst_16 : f32 to vector<8x4xf32>
      %c0_17 = arith.constant 0 : index
      %c0_18 = arith.constant 0 : index
      %26 = vector.load %arg15[%c0_17, %c0_18] : memref<8x4xf32, #tpu.memory_space<vmem>>, vector<8x4xf32>
      tpu.vector_store %arg15[%c0_17, %c0_18], %25 {strides = array<i32>} : memref<8x4xf32, #tpu.memory_space<vmem>>, vector<8x4xf32>,
      %cst_19 = arith.constant 0.000000e+00 : f32
      %27 = vector.broadcast %cst_19 : f32 to vector<8x32xf32>
      %c0_20 = arith.constant 0 : index
      %c0_21 = arith.constant 0 : index
      %28 = vector.load %arg13[%c0_20, %c0_21] : memref<8x32xf32, #tpu.memory_space<vmem>>, vector<8x32xf32>
      tpu.vector_store %arg13[%c0_20, %c0_21], %27 {strides = array<i32>} : memref<8x32xf32, #tpu.memory_space<vmem>>, vector<8x32xf32>,
    } else {
    }
    %c1_i32 = arith.constant 1 : i32
    %3 = arith.muli %arg0, %c1_i32 : i32
    %4 = arith.addi %3, %arg1 : i32
    %c1_i32_1 = arith.constant 1 : i32
    %5 = arith.muli %4, %c1_i32_1 : i32
    %6 = arith.addi %5, %arg2 : i32
    %7 = arith.index_cast %6 : i32 to index
    %8 = memref.load %arg3[%7] : memref<2xi32, #tpu.memory_space<smem>>
    %c0_i32_2 = arith.constant 0 : i32
    %9 = arith.cmpi ne, %8, %c0_i32_2 : i32
    %10 = arith.extui %9 : i1 to i32
    %c0_i32_3 = arith.constant 0 : i32
    %11 = arith.cmpi ne, %10, %c0_i32_3 : i32
    scf.if %11 {
      %c0 = arith.constant 0 : index
      %c0_6 = arith.constant 0 : index
      %c0_7 = arith.constant 0 : index
      %15 = vector.load %arg7[%c0, %c0_6, %c0_7] : memref<1x8x8xbf16, #tpu.memory_space<vmem>>, vector<1x8x8xbf16>
      %16 = vector.shape_cast %15 : vector<1x8x8xbf16> to vector<8x8xbf16>
      %17 = arith.extf %16 : vector<8x8xbf16> to vector<8x8xf32>
      %c0_8 = arith.constant 0 : index
      %c0_9 = arith.constant 0 : index
      %18 = vector.load %arg12[%c0_8, %c0_9] : memref<8x32xbf16, #tpu.memory_space<vmem>>, vector<8x32xbf16>
      %c0_10 = arith.constant 0 : index
      %c0_11 = arith.constant 0 : index
      %c0_12 = arith.constant 0 : index
      %19 = vector.load %arg5[%c0_10, %c0_11, %c0_12] : memref<1x8x32xbf16, #tpu.memory_space<vmem>>, vector<1x8x8xbf16>
      %20 = vector.shape_cast %19 : vector<1x8x8xbf16> to vector<8x8xbf16>
      %c0_13 = arith.constant 0 : index
      %c0_14 = arith.constant 0 : index
      %c0_15 = arith.constant 0 : index
      %21 = vector.load %arg6[%c0_13, %c0_14, %c0_15] : memref<1x8x32xbf16, #tpu.memory_space<vmem>>, vector<1x8x8xbf16>
      %22 = vector.shape_cast %21 : vector<1x8x8xbf16> to vector<8x8xbf16>
      %23 = vector.extract_strided_slice %18 {offsets = [0, 0], sizes = [8, 8], strides = [1, 1]} : vector<8x32xbf16> to vector<8x8xbf16>
      %cst = arith.constant dense<0.000000e+00> : vector<8x8xf32>
      %24 = tpu.matmul %23, %20, %cst {dimension_numbers = #tpu.dot_dimension_numbers<[1], [1], [0], [0], [0, 0, 1, 0], [], []>} : vector<8x8xbf16>, vector<8x8xbf16>, vector<8x8xf32> -> vector<8x8xf32>
      %25 = arith.addf %24, %17 : vector<8x8xf32>
      %c0_16 = arith.constant 0 : index
      %c0_17 = arith.constant 0 : index
      %26 = vector.load %arg14[%c0_16, %c0_17] : memref<8x4xf32, #tpu.memory_space<vmem>>, vector<8x1xf32>
      %c0_18 = arith.constant 0 : index
      %c0_19 = arith.constant 0 : index
      %27 = vector.load %arg15[%c0_18, %c0_19] : memref<8x4xf32, #tpu.memory_space<vmem>>, vector<8x1xf32>
      %cst_20 = arith.constant dense<0xFF800000> : vector<8xf32>
      %28 = vector.multi_reduction <maximumf>, %25, %cst_20 [1] : vector<8x8xf32> to vector<8xf32>
      %29 = vector.shape_cast %28 : vector<8xf32> to vector<8x1xf32>
      %30 = arith.maximumf %26, %29 : vector<8x1xf32>
      %31 = arith.subf %26, %30 : vector<8x1xf32>
      %32 = math.exp %31 : vector<8x1xf32>
      %33 = vector.broadcast %30 : vector<8x1xf32> to vector<8x8xf32>
      %34 = arith.subf %25, %33 : vector<8x8xf32>
      %35 = math.exp %34 : vector<8x8xf32>
      %36 = arith.mulf %32, %27 : vector<8x1xf32>
      %cst_21 = arith.constant dense<0.000000e+00> : vector<8xf32>
      %37 = vector.multi_reduction <add>, %35, %cst_21 [1] : vector<8x8xf32> to vector<8xf32>
      %38 = vector.shape_cast %37 : vector<8xf32> to vector<8x1xf32>
      %39 = arith.addf %36, %38 : vector<8x1xf32>
      %c0_22 = arith.constant 0 : index
      %c0_23 = arith.constant 0 : index
      %40 = vector.load %arg15[%c0_22, %c0_23] : memref<8x4xf32, #tpu.memory_space<vmem>>, vector<8x1xf32>
      tpu.vector_store %arg15[%c0_22, %c0_23], %39 {strides = array<i32>} : memref<8x4xf32, #tpu.memory_space<vmem>>, vector<8x1xf32>,
      %c0_24 = arith.constant 0 : index
      %c0_25 = arith.constant 0 : index
      %41 = vector.load %arg14[%c0_24, %c0_25] : memref<8x4xf32, #tpu.memory_space<vmem>>, vector<8x1xf32>
      tpu.vector_store %arg14[%c0_24, %c0_25], %30 {strides = array<i32>} : memref<8x4xf32, #tpu.memory_space<vmem>>, vector<8x1xf32>,
      %c0_26 = arith.constant 0 : index
      %c0_27 = arith.constant 0 : index
      %42 = vector.load %arg13[%c0_26, %c0_27] : memref<8x32xf32, #tpu.memory_space<vmem>>, vector<8x8xf32>
      %43 = vector.broadcast %32 : vector<8x1xf32> to vector<8x8xf32>
      %44 = arith.mulf %43, %42 : vector<8x8xf32>
      %45 = arith.truncf %35 : vector<8x8xf32> to vector<8x8xbf16>
      %cst_28 = arith.constant dense<0.000000e+00> : vector<8x8xf32>
      %46 = tpu.matmul %45, %22, %cst_28 {dimension_numbers = #tpu.dot_dimension_numbers<[1], [0], [0], [1], [0, 0, 1, 1], [], []>} : vector<8x8xbf16>, vector<8x8xbf16>, vector<8x8xf32> -> vector<8x8xf32>
      %47 = arith.addf %44, %46 : vector<8x8xf32>
      %c0_29 = arith.constant 0 : index
      %c0_30 = arith.constant 0 : index
      %48 = vector.load %arg13[%c0_29, %c0_30] : memref<8x32xf32, #tpu.memory_space<vmem>>, vector<8x8xf32>
      tpu.vector_store %arg13[%c0_29, %c0_30], %47 {strides = array<i32>} : memref<8x32xf32, #tpu.memory_space<vmem>>, vector<8x8xf32>,
      %c0_31 = arith.constant 0 : index
      %c0_32 = arith.constant 0 : index
      %c8 = arith.constant 8 : index
      %49 = vector.load %arg5[%c0_31, %c0_32, %c8] : memref<1x8x32xbf16, #tpu.memory_space<vmem>>, vector<1x8x8xbf16>
      %50 = vector.shape_cast %49 : vector<1x8x8xbf16> to vector<8x8xbf16>
      %c0_33 = arith.constant 0 : index
      %c0_34 = arith.constant 0 : index
      %c8_35 = arith.constant 8 : index
      %51 = vector.load %arg6[%c0_33, %c0_34, %c8_35] : memref<1x8x32xbf16, #tpu.memory_space<vmem>>, vector<1x8x8xbf16>
      %52 = vector.shape_cast %51 : vector<1x8x8xbf16> to vector<8x8xbf16>
      %53 = vector.extract_strided_slice %18 {offsets = [0, 8], sizes = [8, 8], strides = [1, 1]} : vector<8x32xbf16> to vector<8x8xbf16>
      %cst_36 = arith.constant dense<0.000000e+00> : vector<8x8xf32>
      %54 = tpu.matmul %53, %50, %cst_36 {dimension_numbers = #tpu.dot_dimension_numbers<[1], [1], [0], [0], [0, 0, 1, 0], [], []>} : vector<8x8xbf16>, vector<8x8xbf16>, vector<8x8xf32> -> vector<8x8xf32>
      %55 = arith.addf %54, %17 : vector<8x8xf32>
      %c0_37 = arith.constant 0 : index
      %c1 = arith.constant 1 : index
      %56 = vector.load %arg14[%c0_37, %c1] : memref<8x4xf32, #tpu.memory_space<vmem>>, vector<8x1xf32>
      %c0_38 = arith.constant 0 : index
      %c1_39 = arith.constant 1 : index
      %57 = vector.load %arg15[%c0_38, %c1_39] : memref<8x4xf32, #tpu.memory_space<vmem>>, vector<8x1xf32>
      %cst_40 = arith.constant dense<0xFF800000> : vector<8xf32>
      %58 = vector.multi_reduction <maximumf>, %55, %cst_40 [1] : vector<8x8xf32> to vector<8xf32>
      %59 = vector.shape_cast %58 : vector<8xf32> to vector<8x1xf32>
      %60 = arith.maximumf %56, %59 : vector<8x1xf32>
      %61 = arith.subf %56, %60 : vector<8x1xf32>
      %62 = math.exp %61 : vector<8x1xf32>
      %63 = vector.broadcast %60 : vector<8x1xf32> to vector<8x8xf32>
      %64 = arith.subf %55, %63 : vector<8x8xf32>
      %65 = math.exp %64 : vector<8x8xf32>
      %66 = arith.mulf %62, %57 : vector<8x1xf32>
      %cst_41 = arith.constant dense<0.000000e+00> : vector<8xf32>
      %67 = vector.multi_reduction <add>, %65, %cst_41 [1] : vector<8x8xf32> to vector<8xf32>
      %68 = vector.shape_cast %67 : vector<8xf32> to vector<8x1xf32>
      %69 = arith.addf %66, %68 : vector<8x1xf32>
      %c0_42 = arith.constant 0 : index
      %c1_43 = arith.constant 1 : index
      %70 = vector.load %arg15[%c0_42, %c1_43] : memref<8x4xf32, #tpu.memory_space<vmem>>, vector<8x1xf32>
      tpu.vector_store %arg15[%c0_42, %c1_43], %69 {strides = array<i32>} : memref<8x4xf32, #tpu.memory_space<vmem>>, vector<8x1xf32>,
      %c0_44 = arith.constant 0 : index
      %c1_45 = arith.constant 1 : index
      %71 = vector.load %arg14[%c0_44, %c1_45] : memref<8x4xf32, #tpu.memory_space<vmem>>, vector<8x1xf32>
      tpu.vector_store %arg14[%c0_44, %c1_45], %60 {strides = array<i32>} : memref<8x4xf32, #tpu.memory_space<vmem>>, vector<8x1xf32>,
      %c0_46 = arith.constant 0 : index
      %c8_47 = arith.constant 8 : index
      %72 = vector.load %arg13[%c0_46, %c8_47] : memref<8x32xf32, #tpu.memory_space<vmem>>, vector<8x8xf32>
      %73 = vector.broadcast %62 : vector<8x1xf32> to vector<8x8xf32>
      %74 = arith.mulf %73, %72 : vector<8x8xf32>
      %75 = arith.truncf %65 : vector<8x8xf32> to vector<8x8xbf16>
      %cst_48 = arith.constant dense<0.000000e+00> : vector<8x8xf32>
      %76 = tpu.matmul %75, %52, %cst_48 {dimension_numbers = #tpu.dot_dimension_numbers<[1], [0], [0], [1], [0, 0, 1, 1], [], []>} : vector<8x8xbf16>, vector<8x8xbf16>, vector<8x8xf32> -> vector<8x8xf32>
      %77 = arith.addf %74, %76 : vector<8x8xf32>
      %c0_49 = arith.constant 0 : index
      %c8_50 = arith.constant 8 : index
      %78 = vector.load %arg13[%c0_49, %c8_50] : memref<8x32xf32, #tpu.memory_space<vmem>>, vector<8x8xf32>
      tpu.vector_store %arg13[%c0_49, %c8_50], %77 {strides = array<i32>} : memref<8x32xf32, #tpu.memory_space<vmem>>, vector<8x8xf32>,
      %c0_51 = arith.constant 0 : index
      %c0_52 = arith.constant 0 : index
      %c16 = arith.constant 16 : index
      %79 = vector.load %arg5[%c0_51, %c0_52, %c16] : memref<1x8x32xbf16, #tpu.memory_space<vmem>>, vector<1x8x8xbf16>
      %80 = vector.shape_cast %79 : vector<1x8x8xbf16> to vector<8x8xbf16>
      %c0_53 = arith.constant 0 : index
      %c0_54 = arith.constant 0 : index
      %c16_55 = arith.constant 16 : index
      %81 = vector.load %arg6[%c0_53, %c0_54, %c16_55] : memref<1x8x32xbf16, #tpu.memory_space<vmem>>, vector<1x8x8xbf16>
      %82 = vector.shape_cast %81 : vector<1x8x8xbf16> to vector<8x8xbf16>
      %83 = vector.extract_strided_slice %18 {offsets = [0, 16], sizes = [8, 8], strides = [1, 1]} : vector<8x32xbf16> to vector<8x8xbf16>
      %cst_56 = arith.constant dense<0.000000e+00> : vector<8x8xf32>
      %84 = tpu.matmul %83, %80, %cst_56 {dimension_numbers = #tpu.dot_dimension_numbers<[1], [1], [0], [0], [0, 0, 1, 0], [], []>} : vector<8x8xbf16>, vector<8x8xbf16>, vector<8x8xf32> -> vector<8x8xf32>
      %85 = arith.addf %84, %17 : vector<8x8xf32>
      %c0_57 = arith.constant 0 : index
      %c2 = arith.constant 2 : index
      %86 = vector.load %arg14[%c0_57, %c2] : memref<8x4xf32, #tpu.memory_space<vmem>>, vector<8x1xf32>
      %c0_58 = arith.constant 0 : index
      %c2_59 = arith.constant 2 : index
      %87 = vector.load %arg15[%c0_58, %c2_59] : memref<8x4xf32, #tpu.memory_space<vmem>>, vector<8x1xf32>
      %cst_60 = arith.constant dense<0xFF800000> : vector<8xf32>
      %88 = vector.multi_reduction <maximumf>, %85, %cst_60 [1] : vector<8x8xf32> to vector<8xf32>
      %89 = vector.shape_cast %88 : vector<8xf32> to vector<8x1xf32>
      %90 = arith.maximumf %86, %89 : vector<8x1xf32>
      %91 = arith.subf %86, %90 : vector<8x1xf32>
      %92 = math.exp %91 : vector<8x1xf32>
      %93 = vector.broadcast %90 : vector<8x1xf32> to vector<8x8xf32>
      %94 = arith.subf %85, %93 : vector<8x8xf32>
      %95 = math.exp %94 : vector<8x8xf32>
      %96 = arith.mulf %92, %87 : vector<8x1xf32>
      %cst_61 = arith.constant dense<0.000000e+00> : vector<8xf32>
      %97 = vector.multi_reduction <add>, %95, %cst_61 [1] : vector<8x8xf32> to vector<8xf32>
      %98 = vector.shape_cast %97 : vector<8xf32> to vector<8x1xf32>
      %99 = arith.addf %96, %98 : vector<8x1xf32>
      %c0_62 = arith.constant 0 : index
      %c2_63 = arith.constant 2 : index
      %100 = vector.load %arg15[%c0_62, %c2_63] : memref<8x4xf32, #tpu.memory_space<vmem>>, vector<8x1xf32>
      tpu.vector_store %arg15[%c0_62, %c2_63], %99 {strides = array<i32>} : memref<8x4xf32, #tpu.memory_space<vmem>>, vector<8x1xf32>,
      %c0_64 = arith.constant 0 : index
      %c2_65 = arith.constant 2 : index
      %101 = vector.load %arg14[%c0_64, %c2_65] : memref<8x4xf32, #tpu.memory_space<vmem>>, vector<8x1xf32>
      tpu.vector_store %arg14[%c0_64, %c2_65], %90 {strides = array<i32>} : memref<8x4xf32, #tpu.memory_space<vmem>>, vector<8x1xf32>,
      %c0_66 = arith.constant 0 : index
      %c16_67 = arith.constant 16 : index
      %102 = vector.load %arg13[%c0_66, %c16_67] : memref<8x32xf32, #tpu.memory_space<vmem>>, vector<8x8xf32>
      %103 = vector.broadcast %92 : vector<8x1xf32> to vector<8x8xf32>
      %104 = arith.mulf %103, %102 : vector<8x8xf32>
      %105 = arith.truncf %95 : vector<8x8xf32> to vector<8x8xbf16>
      %cst_68 = arith.constant dense<0.000000e+00> : vector<8x8xf32>
      %106 = tpu.matmul %105, %82, %cst_68 {dimension_numbers = #tpu.dot_dimension_numbers<[1], [0], [0], [1], [0, 0, 1, 1], [], []>} : vector<8x8xbf16>, vector<8x8xbf16>, vector<8x8xf32> -> vector<8x8xf32>
      %107 = arith.addf %104, %106 : vector<8x8xf32>
      %c0_69 = arith.constant 0 : index
      %c16_70 = arith.constant 16 : index
      %108 = vector.load %arg13[%c0_69, %c16_70] : memref<8x32xf32, #tpu.memory_space<vmem>>, vector<8x8xf32>
      tpu.vector_store %arg13[%c0_69, %c16_70], %107 {strides = array<i32>} : memref<8x32xf32, #tpu.memory_space<vmem>>, vector<8x8xf32>,
      %c0_71 = arith.constant 0 : index
      %c0_72 = arith.constant 0 : index
      %c24 = arith.constant 24 : index
      %109 = vector.load %arg5[%c0_71, %c0_72, %c24] : memref<1x8x32xbf16, #tpu.memory_space<vmem>>, vector<1x8x8xbf16>
      %110 = vector.shape_cast %109 : vector<1x8x8xbf16> to vector<8x8xbf16>
      %c0_73 = arith.constant 0 : index
      %c0_74 = arith.constant 0 : index
      %c24_75 = arith.constant 24 : index
      %111 = vector.load %arg6[%c0_73, %c0_74, %c24_75] : memref<1x8x32xbf16, #tpu.memory_space<vmem>>, vector<1x8x8xbf16>
      %112 = vector.shape_cast %111 : vector<1x8x8xbf16> to vector<8x8xbf16>
      %113 = vector.extract_strided_slice %18 {offsets = [0, 24], sizes = [8, 8], strides = [1, 1]} : vector<8x32xbf16> to vector<8x8xbf16>
      %cst_76 = arith.constant dense<0.000000e+00> : vector<8x8xf32>
      %114 = tpu.matmul %113, %110, %cst_76 {dimension_numbers = #tpu.dot_dimension_numbers<[1], [1], [0], [0], [0, 0, 1, 0], [], []>} : vector<8x8xbf16>, vector<8x8xbf16>, vector<8x8xf32> -> vector<8x8xf32>
      %115 = arith.addf %114, %17 : vector<8x8xf32>
      %c0_77 = arith.constant 0 : index
      %c3 = arith.constant 3 : index
      %116 = vector.load %arg14[%c0_77, %c3] : memref<8x4xf32, #tpu.memory_space<vmem>>, vector<8x1xf32>
      %c0_78 = arith.constant 0 : index
      %c3_79 = arith.constant 3 : index
      %117 = vector.load %arg15[%c0_78, %c3_79] : memref<8x4xf32, #tpu.memory_space<vmem>>, vector<8x1xf32>
      %cst_80 = arith.constant dense<0xFF800000> : vector<8xf32>
      %118 = vector.multi_reduction <maximumf>, %115, %cst_80 [1] : vector<8x8xf32> to vector<8xf32>
      %119 = vector.shape_cast %118 : vector<8xf32> to vector<8x1xf32>
      %120 = arith.maximumf %116, %119 : vector<8x1xf32>
      %121 = arith.subf %116, %120 : vector<8x1xf32>
      %122 = math.exp %121 : vector<8x1xf32>
      %123 = vector.broadcast %120 : vector<8x1xf32> to vector<8x8xf32>
      %124 = arith.subf %115, %123 : vector<8x8xf32>
      %125 = math.exp %124 : vector<8x8xf32>
      %126 = arith.mulf %122, %117 : vector<8x1xf32>
      %cst_81 = arith.constant dense<0.000000e+00> : vector<8xf32>
      %127 = vector.multi_reduction <add>, %125, %cst_81 [1] : vector<8x8xf32> to vector<8xf32>
      %128 = vector.shape_cast %127 : vector<8xf32> to vector<8x1xf32>
      %129 = arith.addf %126, %128 : vector<8x1xf32>
      %c0_82 = arith.constant 0 : index
      %c3_83 = arith.constant 3 : index
      %130 = vector.load %arg15[%c0_82, %c3_83] : memref<8x4xf32, #tpu.memory_space<vmem>>, vector<8x1xf32>
      tpu.vector_store %arg15[%c0_82, %c3_83], %129 {strides = array<i32>} : memref<8x4xf32, #tpu.memory_space<vmem>>, vector<8x1xf32>,
      %c0_84 = arith.constant 0 : index
      %c3_85 = arith.constant 3 : index
      %131 = vector.load %arg14[%c0_84, %c3_85] : memref<8x4xf32, #tpu.memory_space<vmem>>, vector<8x1xf32>
      tpu.vector_store %arg14[%c0_84, %c3_85], %120 {strides = array<i32>} : memref<8x4xf32, #tpu.memory_space<vmem>>, vector<8x1xf32>,
      %c0_86 = arith.constant 0 : index
      %c24_87 = arith.constant 24 : index
      %132 = vector.load %arg13[%c0_86, %c24_87] : memref<8x32xf32, #tpu.memory_space<vmem>>, vector<8x8xf32>
      %133 = vector.broadcast %122 : vector<8x1xf32> to vector<8x8xf32>
      %134 = arith.mulf %133, %132 : vector<8x8xf32>
      %135 = arith.truncf %125 : vector<8x8xf32> to vector<8x8xbf16>
      %cst_88 = arith.constant dense<0.000000e+00> : vector<8x8xf32>
      %136 = tpu.matmul %135, %112, %cst_88 {dimension_numbers = #tpu.dot_dimension_numbers<[1], [0], [0], [1], [0, 0, 1, 1], [], []>} : vector<8x8xbf16>, vector<8x8xbf16>, vector<8x8xf32> -> vector<8x8xf32>
      %137 = arith.addf %134, %136 : vector<8x8xf32>
      %c0_89 = arith.constant 0 : index
      %c24_90 = arith.constant 24 : index
      %138 = vector.load %arg13[%c0_89, %c24_90] : memref<8x32xf32, #tpu.memory_space<vmem>>, vector<8x8xf32>
      tpu.vector_store %arg13[%c0_89, %c24_90], %137 {strides = array<i32>} : memref<8x32xf32, #tpu.memory_space<vmem>>, vector<8x8xf32>,
    } else {
    }
    %c0_i32_4 = arith.constant 0 : i32
    %12 = arith.cmpi eq, %arg2, %c0_i32_4 : i32
    %13 = arith.extui %12 : i1 to i32
    %c0_i32_5 = arith.constant 0 : i32
    %14 = arith.cmpi ne, %13, %c0_i32_5 : i32
    scf.if %14 {
      %c0 = arith.constant 0 : index
      %c0_6 = arith.constant 0 : index
      %15 = vector.load %arg13[%c0, %c0_6] : memref<8x32xf32, #tpu.memory_space<vmem>>, vector<8x8xf32>
      %c0_7 = arith.constant 0 : index
      %c0_8 = arith.constant 0 : index
      %16 = vector.load %arg15[%c0_7, %c0_8] : memref<8x4xf32, #tpu.memory_space<vmem>>, vector<8x1xf32>
      %17 = tpu.reciprocal %16 {approx = true} : vector<8x1xf32> -> vector<8x1xf32>
      %18 = vector.broadcast %17 : vector<8x1xf32> to vector<8x8xf32>
      %19 = arith.mulf %15, %18 : vector<8x8xf32>
      %c0_9 = arith.constant 0 : index
      %c0_10 = arith.constant 0 : index
      %20 = vector.load %arg13[%c0_9, %c0_10] : memref<8x32xf32, #tpu.memory_space<vmem>>, vector<8x8xf32>
      tpu.vector_store %arg13[%c0_9, %c0_10], %19 {strides = array<i32>} : memref<8x32xf32, #tpu.memory_space<vmem>>, vector<8x8xf32>,
      %c0_11 = arith.constant 0 : index
      %c8 = arith.constant 8 : index
      %21 = vector.load %arg13[%c0_11, %c8] : memref<8x32xf32, #tpu.memory_space<vmem>>, vector<8x8xf32>
      %c0_12 = arith.constant 0 : index
      %c1 = arith.constant 1 : index
      %22 = vector.load %arg15[%c0_12, %c1] : memref<8x4xf32, #tpu.memory_space<vmem>>, vector<8x1xf32>
      %23 = tpu.reciprocal %22 {approx = true} : vector<8x1xf32> -> vector<8x1xf32>
      %24 = vector.broadcast %23 : vector<8x1xf32> to vector<8x8xf32>
      %25 = arith.mulf %21, %24 : vector<8x8xf32>
      %c0_13 = arith.constant 0 : index
      %c8_14 = arith.constant 8 : index
      %26 = vector.load %arg13[%c0_13, %c8_14] : memref<8x32xf32, #tpu.memory_space<vmem>>, vector<8x8xf32>
      tpu.vector_store %arg13[%c0_13, %c8_14], %25 {strides = array<i32>} : memref<8x32xf32, #tpu.memory_space<vmem>>, vector<8x8xf32>,
      %c0_15 = arith.constant 0 : index
      %c16 = arith.constant 16 : index
      %27 = vector.load %arg13[%c0_15, %c16] : memref<8x32xf32, #tpu.memory_space<vmem>>, vector<8x8xf32>
      %c0_16 = arith.constant 0 : index
      %c2 = arith.constant 2 : index
      %28 = vector.load %arg15[%c0_16, %c2] : memref<8x4xf32, #tpu.memory_space<vmem>>, vector<8x1xf32>
      %29 = tpu.reciprocal %28 {approx = true} : vector<8x1xf32> -> vector<8x1xf32>
      %30 = vector.broadcast %29 : vector<8x1xf32> to vector<8x8xf32>
      %31 = arith.mulf %27, %30 : vector<8x8xf32>
      %c0_17 = arith.constant 0 : index
      %c16_18 = arith.constant 16 : index
      %32 = vector.load %arg13[%c0_17, %c16_18] : memref<8x32xf32, #tpu.memory_space<vmem>>, vector<8x8xf32>
      tpu.vector_store %arg13[%c0_17, %c16_18], %31 {strides = array<i32>} : memref<8x32xf32, #tpu.memory_space<vmem>>, vector<8x8xf32>,
      %c0_19 = arith.constant 0 : index
      %c24 = arith.constant 24 : index
      %33 = vector.load %arg13[%c0_19, %c24] : memref<8x32xf32, #tpu.memory_space<vmem>>, vector<8x8xf32>
      %c0_20 = arith.constant 0 : index
      %c3 = arith.constant 3 : index
      %34 = vector.load %arg15[%c0_20, %c3] : memref<8x4xf32, #tpu.memory_space<vmem>>, vector<8x1xf32>
      %35 = tpu.reciprocal %34 {approx = true} : vector<8x1xf32> -> vector<8x1xf32>
      %36 = vector.broadcast %35 : vector<8x1xf32> to vector<8x8xf32>
      %37 = arith.mulf %33, %36 : vector<8x8xf32>
      %c0_21 = arith.constant 0 : index
      %c24_22 = arith.constant 24 : index
      %38 = vector.load %arg13[%c0_21, %c24_22] : memref<8x32xf32, #tpu.memory_space<vmem>>, vector<8x8xf32>
      tpu.vector_store %arg13[%c0_21, %c24_22], %37 {strides = array<i32>} : memref<8x32xf32, #tpu.memory_space<vmem>>, vector<8x8xf32>,
      %c0_23 = arith.constant 0 : index
      %c0_24 = arith.constant 0 : index
      %39 = vector.load %arg13[%c0_23, %c0_24] : memref<8x32xf32, #tpu.memory_space<vmem>>, vector<8x32xf32>
      %40 = arith.truncf %39 : vector<8x32xf32> to vector<8x32xbf16>
      %c0_25 = arith.constant 0 : index
      %c0_26 = arith.constant 0 : index
      %41 = vector.load %arg9[%c0_25, %c0_26] : memref<32x32xbf16, #tpu.memory_space<vmem>>, vector<32x32xbf16>
      %cst = arith.constant dense<0.000000e+00> : vector<8x32xf32>
      %42 = tpu.matmul %40, %41, %cst {dimension_numbers = #tpu.dot_dimension_numbers<[1], [0], [0], [1], [0, 0, 1, 1], [], []>} : vector<8x32xbf16>, vector<32x32xbf16>, vector<8x32xf32> -> vector<8x32xf32>
      %c0_27 = arith.constant 0 : index
      %c0_28 = arith.constant 0 : index
      %43 = vector.load %arg10[%c0_27, %c0_28] : memref<1x32xf32, #tpu.memory_space<vmem>>, vector<1x32xf32>
      %44 = vector.broadcast %43 : vector<1x32xf32> to vector<8x32xf32>
      %45 = arith.addf %42, %44 : vector<8x32xf32>
      %c0_29 = arith.constant 0 : index
      %c0_30 = arith.constant 0 : index
      %c0_31 = arith.constant 0 : index
      %46 = vector.load %arg11[%c0_29, %c0_30, %c0_31] : memref<1x8x32xf32, #tpu.memory_space<vmem>>, vector<1x8x32xf32>
      %47 = vector.shape_cast %46 : vector<1x8x32xf32> to vector<8x32xf32>
      %48 = vector.shape_cast %45 : vector<8x32xf32> to vector<1x8x32xf32>
      tpu.vector_store %arg11[%c0_29, %c0_30, %c0_31], %48 {strides = array<i32>} : memref<1x8x32xf32, #tpu.memory_space<vmem>>, vector<1x8x32xf32>,
    } else {
    }
    return
  }
  func.func @transform_0(%arg0: i32, %arg1: i32, %arg2: i32, %arg3: memref<2xi32, #tpu.memory_space<smem>>) -> (i32, i32, i32) {
    %c0_i32 = arith.constant 0 : i32
    %c0_i32_0 = arith.constant 0 : i32
    return %arg0, %arg1, %c0_i32 : i32, i32, i32
  }
  func.func @transform_1(%arg0: i32, %arg1: i32, %arg2: i32, %arg3: memref<2xi32, #tpu.memory_space<smem>>) -> (i32, i32, i32) {
    %c0_i32 = arith.constant 0 : i32
    %c0_i32_0 = arith.constant 0 : i32
    return %arg0, %arg2, %c0_i32 : i32, i32, i32
  }
  func.func @transform_2(%arg0: i32, %arg1: i32, %arg2: i32, %arg3: memref<2xi32, #tpu.memory_space<smem>>) -> (i32, i32, i32) {
    %c0_i32 = arith.constant 0 : i32
    %c0_i32_0 = arith.constant 0 : i32
    return %arg0, %arg2, %c0_i32 : i32, i32, i32
  }
  func.func @transform_3(%arg0: i32, %arg1: i32, %arg2: i32, %arg3: memref<2xi32, #tpu.memory_space<smem>>) -> (i32, i32, i32) {
    %c0_i32 = arith.constant 0 : i32
    return %arg0, %arg1, %arg2 : i32, i32, i32
  }
  func.func @transform_4(%arg0: i32, %arg1: i32, %arg2: i32, %arg3: memref<2xi32, #tpu.memory_space<smem>>) -> (i32, i32) {
    %c0_i32 = arith.constant 0 : i32
    %c0_i32_0 = arith.constant 0 : i32
    %c0_i32_1 = arith.constant 0 : i32
    return %c0_i32, %c0_i32_0 : i32, i32
  }
  func.func @transform_5(%arg0: i32, %arg1: i32, %arg2: i32, %arg3: memref<2xi32, #tpu.memory_space<smem>>) -> (i32, i32) {
    %c0_i32 = arith.constant 0 : i32
    %c0_i32_0 = arith.constant 0 : i32
    %c0_i32_1 = arith.constant 0 : i32
    return %c0_i32, %c0_i32_0 : i32, i32
  }
  func.func @transform_6(%arg0: i32, %arg1: i32, %arg2: i32, %arg3: memref<2xi32, #tpu.memory_space<smem>>) -> (i32, i32) {
    %c0_i32 = arith.constant 0 : i32
    %c0_i32_0 = arith.constant 0 : i32
    %c0_i32_1 = arith.constant 0 : i32
    return %c0_i32, %c0_i32_0 : i32, i32
  }
  func.func @transform_7(%arg0: i32, %arg1: i32, %arg2: i32, %arg3: memref<2xi32, #tpu.memory_space<smem>>) -> (i32, i32, i32) {
    %c0_i32 = arith.constant 0 : i32
    %c0_i32_0 = arith.constant 0 : i32
    return %arg0, %arg1, %c0_i32 : i32, i32, i32
  }
}

</mosaic_0001>

<bundles_post_ra>
// kernel: tpu_custom_call.1
= control target key start
LH: loop header
LB: loop body
LE: loop exit
PB: predicated region body
PF: predicated region fallthrough
CT: control target
= control target key end

     0   :  { %s2521_s0 = inlined_call_operand.hbm [shape: s32[2], index: 0, kind: input, shape index: {}]   ;;  %s2522_s1 = inlined_call_operand.hbm [shape: bf16[2,8,32], index: 1, kind: input, shape index: {}]   ;;  %s2523_s2 = inlined_call_operand.hbm [shape: bf16[2,8,32], index: 2, kind: input, shape index: {}]   ;;  %s2524_s3 = inlined_call_operand.hbm [shape: bf16[2,8,32], index: 3, kind: input, shape index: {}]   ;;  %s2525_s4 = inlined_call_operand.hbm [shape: bf16[2,8,8], index: 4, kind: input, shape index: {}]   ;;  %s2526_s5 = inlined_call_operand.vmem [shape: bf16[32,32], index: 5, kind: input, shape index: {}]   ;;  %s2527_s6 = inlined_call_operand.hbm [shape: bf16[32,32], index: 6, kind: input, shape index: {}]   ;;  %s2528_s7 = inlined_call_operand.vmem [shape: f32[1,32], index: 7, kind: input, shape index: {}]   ;;  %s2529_s8 = inlined_call_operand.hbm [shape: f32[2,8,32], index: 8, kind: output, shape index: {}]  }
   0x1   :  { %2544 = sst [smem:[#allocation30_spill]] %s2522_s1  ;;  %s1692_s29 = scalar_lea.hbm %s2521_s0, 16 }
   0x2   :  { %2545 = sst [smem:[#allocation31_spill]] %s2523_s2  ;;  %p1693_p0 = scmp.ne.s32.totalorder %s2521_s0, %s1692_s29 }
   0x3   :  { %2546 = sst [smem:[#allocation32_spill]] %s2527_s6  ;;  %p1696_p1 = scmp.lt.u32.totalorder %s1692_s29, %s2521_s0 }
   0x4   :  { %2547 = sst [smem:[#allocation33_spill]] %s2529_s8 }
   0x5   :  { %p1698_p2 = pnand %p1696_p1, %p1693_p0 }
   0x7   :  { %1701 = shalt.err (!%p1698_p2)  }
   0x8   :  { %s1948_s12 = smov [#allocation7]  }
   0x9   :  { %14 = dma.hbm_to_smem %s2521_s0, 16, %s1948_s12, [#allocation6] }
   0xa   :  { %1902 = dma.done.wait [#allocation6], 16 }
   0xb   :  { %1903 = vsyncadd [#allocation6], 4294967280 }
   0xc   :  { %16 = sfence }
   0xd   :  { %17 = vsyncpa [#allocation9], 0 }
   0xe   :  { %19 = vsyncpa [#allocation9 + $0x1], 0 }
   0xf   :  { %20 = vsyncpa [#allocation12], 0 }
  0x10   :  { %22 = vsyncpa [#allocation12 + $0x1], 0 }
  0x11   :  { %23 = vsyncpa [#allocation15], 0 }
  0x12   :  { %25 = vsyncpa [#allocation15 + $0x1], 0 }
  0x13   :  { %26 = vsyncpa [#allocation10], 0 }
  0x14   :  { %28 = vsyncpa [#allocation10 + $0x1], 0  ;;  %s2033_s15 = smov 0   ;;  %s2035_s16 = smov 0  }
  0x15   :  { %s2037_s17 = smov 0   ;;  %s2039_s18 = smov 0  }
  0x16   :  { %s2041_s0 = smov 0   ;;  %s2043_s19 = smov 0  }
  0x17 LB: > { %2548 = sst [smem:[#allocation24_spill]] %s1926_s15  ;;  %s2064_s20 = sadd.s32 4294967295, %s1946_s19   ;;  %s1946_s19 = sphi %s2043_s19, %s34_s19   ;;  %s1942_s0 = sphi %s2041_s0, %s2582_s0   ;;  %s1938_s18 = sphi %s2039_s18, %s2581_s18   ;;  %s1934_s17 = sphi %s2037_s17, %s2580_s17   ;;  %s1930_s16 = sphi %s2035_s16, %s2584_s16   ;;  %s1926_s15 = sphi %s2033_s15, %s2583_s15  }
  0x18   : > { %2549 = sst [smem:[#allocation25_spill]] %s1934_s17  ;;  %s1408_s21 = sadd.s32 4294967294, %s1946_s19  }
  0x19   : > { %2550 = sst [smem:[#allocation26_spill]] %s1942_s0  ;;  %p75_p3 = scmp.ne.s32.totalorder %s1930_s16, %s1926_s15 }
  0x1a   : > { %p2530_p4 = scmp.eq.s32.totalorder %s2064_s20, 0  ;;  %p256_p6 = scmp.eq.s32.totalorder %s1408_s21, 1 }
  0x1b   : > { %p1409_p8 = scmp.ge.s32.totalorder %s1946_s19, 1  ;;  %p263_p10 = scmp.lt.s32.totalorder %s1946_s19, 3 }
  0x1c   : > { %p2073_p7 = por %p2530_p4, %p75_p3  ;;  %p2078_p9 = por %p256_p6, %p75_p3 }
  0x1d   : > { %p2083_p11 = pnand %p1409_p8, %p263_p10  ;;  %s1949_s25 = smov [#allocation16]  }
  0x1e   : > { %s2551_s22 = scalar_select %p2073_p7, 1, 0 }
  0x1f   : > { %s2552_s23 = scalar_select %p2078_p9, 1, 0 }
  0x20   : > { %s2554_s24 = scalar_select %p2083_p11, 1, 0 }
  0x21   : > { %2553 = sst [smem:[#allocation27_spill]] %s2552_s23  ;;  %s278_s26 = sshll.u32 %s1949_s25, 4  ;;  %s279_s26 = int_to_ptr.vmem [resolvable:$true] %s278_s26 }
  0x22   : > { %p1554_p12 = pneg %p2083_p11  ;;  %s53_s28 = sadd.s32 1, %s1942_s0 }
  0x23   : > { %s2556_s6 = sld [smem:[#allocation32_spill]] }
  0x24   : > { %p2092_p0 = pnand %p1554_p12, %p2530_p4 }
  0x26   : > { %p1704_p2 = pneg %p2092_p0 }
  0x29   : > { %s1702_s9 = scalar_lea.hbm %s2556_s6, 256 }
  0x2a   : > { %p1703_p1 = scmp.ne.s32.totalorder %s2556_s6, %s1702_s9  ;;  %p1709_p8 = scmp.lt.u32.totalorder %s1702_s9, %s2556_s6 }
  0x2c   : > { %p1705_p3 = pnand %p1704_p2, %p1703_p1 }
  0x2e   : > { %p1706_p6 = pneg %p1705_p3 }
  0x30   : > { %p1711_p10 = pnand %p1709_p8, %p1706_p6 }
  0x32   : > { %1714 = shalt.err (!%p1711_p10)
}
  0x33   : > { %s1715_s14 = scalar_lea.vmem %s279_s26, 256  ;;  %p1723_p5 = scmp.lt.s32.totalorder %s279_s26, %s279_s26 }
  0x34   : > { %p1716_p12 = scmp.ne.s32.totalorder %s279_s26, %s1715_s14  ;;  %p1724_p9 = scmp.lt.s32.totalorder %s1715_s14, %s1715_s14 }
  0x36   : > { %p1718_p13 = pnand %p1716_p12, %p1704_p2  ;;  %p1725_p7 = por %p1724_p9, %p1723_p5 }
  0x38   : > { %p1719_p4 = pneg %p1718_p13 }
  0x3a   : > { %p1726_p11 = pnand %p1725_p7, %p1719_p4 }
  0x3c   : > { %1729 = shalt.err (!%p1726_p11)
}
  0x3d   : > { %s1950_s21 = smov 64   ;;  %s1951_s25 = smov 4  }
  0x3e   : > { %1557 = dma.hbm_to_vmem [thread:$0]  (!%p2092_p0), %s2556_s6, 256, %s279_s26, [#allocation15], %s1950_s21, %s1950_s21, %s1951_s25  }
  0x3f   : > { %p55_p4 = scmp.ge.s32.totalorder %s53_s28, 2  ;;  %s62_s9 = sadd.s32 1, %s1934_s17 }
  0x40   : > { %p69_p5 = scmp.ne.s32.totalorder %s1934_s17, %s1930_s16  ;;  %p70_p7 = scmp.eq.s32.totalorder %s1946_s19, 0 }
  0x41   : > { %s2586_s28 = smov (%p55_p4, %s53_s28), 0  ;;  %p2558_p11 = scmp.eq.s32.totalorder %s2064_s20, 1 }
  0x42   : > { %2557 = sst [smem:[#allocation28_spill]] %s2586_s28  ;;  %p71_p9 = por %p70_p7, %p69_p5 }
  0x43   : > { %p2121_p13 = por %p2558_p11, %p69_p5  ;;  %s57_s27 = ssub.s32 %s1942_s0, %s2586_s28 }
  0x44   : > { %p1576_p1 = scmp.lt.s32.totalorder %s1946_s19, 2  ;;  %p60_p2 = scmp.eq.s32.totalorder %s57_s27, 0 }
  0x45   : > { %s2559_s10 = scalar_select %p2121_p13, 1, 0 }
  0x46   : > { %s2533_s11 = sand.u32 1, %s1934_s17   ;;  %s2134_s12 = sshll.u32 %s1942_s0, 6 }
  0x47   : > { %s2131_s26 = sshll.u32 %s2533_s11, 2  ;;  %p2139_p0 = pnand %p1576_p1, %p71_p9 }
  0x48   : > { %s2137_s13 = scalar_select %p60_p2, %s1934_s17, %s62_s9  }
  0x49   : > { %s2561_s14 = scalar_select %p2139_p0, 1, 0 }
  0x4a   : > { %2560 = sst [smem:[#allocation29_spill]] %s2137_s13  ;;  %s2536_s21 = sand.u32 1, %s1946_s19  }
  0x4b   : > { %s2562_s2 = sld [smem:[#allocation31_spill]]  ;;  %s318_s27 = scalar_lea.vmem [#allocation11], %s2131_s26 }
  0x4c   : > { %s326_s11 = sshll.u32 %s318_s27, 4  ;;  %s2155_s9 = scalar_lea.sflag [#allocation12], %s2536_s21  ;;  %s2151_s11 = int_to_ptr.vmem [resolvable:$true] %s326_s11 }
  0x4d   : > { %p2161_p6 = pneg %p2139_p0 }
  0x51   : > { %s2148_s30 = scalar_lea.hbm %s2562_s2, %s2134_s12  ;;  %s1735_s27 = scalar_lea.hbm %s2562_s2, 128 }
  0x52   : > { %s1730_s6 = scalar_lea.hbm %s2148_s30, 64  ;;  %p1736_p12 = scmp.lt.u32.totalorder %s2148_s30, %s2562_s2 }
  0x53   : > { %p1731_p3 = scmp.ne.s32.totalorder %s2148_s30, %s1730_s6  ;;  %p1737_p4 = scmp.lt.u32.totalorder %s1735_s27, %s1730_s6 }
  0x54   : > { %p1739_p7 = scmp.lt.u32.totalorder %s1730_s6, %s2148_s30 }
  0x55   : > { %p1733_p8 = pnand %p2161_p6, %p1731_p3  ;;  %p1738_p5 = por %p1737_p4, %p1736_p12 }
  0x57   : > { %p1734_p10 = pneg %p1733_p8  ;;  %p1740_p9 = por %p1739_p7, %p1738_p5 }
  0x59   : > { %p1741_p11 = pnand %p1740_p9, %p1734_p10 }
  0x5b   : > { %1744 = shalt.err (!%p1741_p11)
}
  0x5c   : > { %s1745_s21 = scalar_lea.vmem %s2151_s11, 64  ;;  %s1952_s25 = smov [#allocation11]  }
  0x5d   : > { %p1746_p1 = scmp.ne.s32.totalorder %s2151_s11, %s1745_s21  ;;  %s1750_s29 = sshll.u32 %s1952_s25, 4  ;;  %s1751_s29 = int_to_ptr.vmem [resolvable:$false] %s1750_s29 }
  0x5e   : > { %s1752_s0 = scalar_lea.vmem %s1751_s29, 128  ;;  %p1753_p8 = scmp.lt.s32.totalorder %s2151_s11, %s1751_s29 }
  0x5f   : > { %p1748_p2 = pnand %p1746_p1, %p2161_p6  ;;  %p1754_p13 = scmp.lt.s32.totalorder %s1752_s0, %s1745_s21 }
  0x61   : > { %p1749_p3 = pneg %p1748_p2  ;;  %p1755_p12 = por %p1754_p13, %p1753_p8 }
  0x63   : > { %p1756_p4 = pnand %p1755_p12, %p1749_p3 }
  0x65   : > { %1759 = shalt.err (!%p1756_p4)
}
  0x66   : > { %1564 = dma.hbm_to_vmem [thread:$0]  (!%p2139_p0), %s2148_s30, 64, %s2151_s11, %s2155_s9  }
  0x67   : > { %s2564_s1 = sld [smem:[#allocation30_spill]]  ;;  %s299_s21 = scalar_lea.vmem [#allocation8], %s2131_s26 }
  0x68   : > { %s307_s25 = sshll.u32 %s299_s21, 4  ;;  %s2198_s2 = scalar_lea.hbm %s2524_s3, %s2134_s12  ;;  %s2192_s25 = int_to_ptr.vmem [resolvable:$true] %s307_s25 }
  0x69   : > { %s2565_s23 = sand.u32 1, %s1934_s17  }
  0x6a   : > { %s296_s11 = scalar_lea.sflag [#allocation9], %s2565_s23 }
  0x6d   : > { %s2189_s27 = scalar_lea.hbm %s2564_s1, %s2134_s12  ;;  %s1765_s15 = scalar_lea.hbm %s2564_s1, 128 }
  0x6e   : > { %s1760_s30 = scalar_lea.hbm %s2189_s27, 64  ;;  %p1766_p7 = scmp.lt.u32.totalorder %s2189_s27, %s2564_s1 }
  0x6f   : > { %p1761_p13 = scmp.ne.s32.totalorder %s2189_s27, %s1760_s30  ;;  %p1767_p9 = scmp.lt.u32.totalorder %s1765_s15, %s1760_s30 }
  0x70   : > { %p1769_p1 = scmp.lt.u32.totalorder %s1760_s30, %s2189_s27 }
  0x71   : > { %p1763_p10 = pnand %p1761_p13, %p2161_p6  ;;  %p1768_p11 = por %p1767_p9, %p1766_p7 }
  0x73   : > { %p1764_p5 = pneg %p1763_p10  ;;  %p1770_p2 = por %p1769_p1, %p1768_p11 }
  0x75   : > { %p1771_p3 = pnand %p1770_p2, %p1764_p5 }
  0x77   : > { %1774 = shalt.err (!%p1771_p3)
}
  0x78   : > { %s1775_s23 = scalar_lea.vmem %s2192_s25, 64  ;;  %s1953_s29 = smov [#allocation8]  }
  0x79   : > { %p1776_p8 = scmp.ne.s32.totalorder %s2192_s25, %s1775_s23  ;;  %s1780_s0 = sshll.u32 %s1953_s29, 4  ;;  %s1781_s0 = int_to_ptr.vmem [resolvable:$false] %s1780_s0 }
  0x7a   : > { %s1782_s8 = scalar_lea.vmem %s1781_s0, 128  ;;  %p1783_p13 = scmp.lt.s32.totalorder %s2192_s25, %s1781_s0 }
  0x7b   : > { %p1778_p12 = pnand %p1776_p8, %p2161_p6  ;;  %p1784_p10 = scmp.lt.s32.totalorder %s1782_s8, %s1775_s23 }
  0x7d   : > { %p1779_p4 = pneg %p1778_p12  ;;  %p1785_p7 = por %p1784_p10, %p1783_p13 }
  0x7f   : > { %p1786_p9 = pnand %p1785_p7, %p1779_p4 }
  0x81   : > { %1789 = shalt.err (!%p1786_p9)
}
  0x82   : > { %1561 = dma.hbm_to_vmem [thread:$0]  (!%p2139_p0), %s2189_s27, 64, %s2192_s25, %s296_s11  }
  0x83   : > { %s337_s15 = scalar_lea.vmem [#allocation13], %s2131_s26  ;;  %s2228_s21 = scalar_lea.hbm %s2525_s4, %s2134_s12 }
  0x84   : > { %s345_s30 = sshll.u32 %s337_s15, 4  ;;  %s1790_s23 = scalar_lea.hbm %s2198_s2, 64  ;;  %s346_s30 = int_to_ptr.vmem [resolvable:$true] %s345_s30 }
  0x85   : > { %p1791_p5 = scmp.ne.s32.totalorder %s2198_s2, %s1790_s23  ;;  %s1795_s8 = scalar_lea.hbm %s2524_s3, 128 }
  0x86   : > { %p1796_p2 = scmp.lt.u32.totalorder %s2198_s2, %s2524_s3  ;;  %p1797_p3 = scmp.lt.u32.totalorder %s1795_s8, %s1790_s23 }
  0x87   : > { %p1793_p11 = pnand %p1791_p5, %p2161_p6  ;;  %p1799_p12 = scmp.lt.u32.totalorder %s1790_s23, %s2198_s2 }
  0x88   : > { %p1798_p8 = por %p1797_p3, %p1796_p2 }
  0x89   : > { %p1794_p1 = pneg %p1793_p11 }
  0x8a   : > { %p1800_p4 = por %p1799_p12, %p1798_p8 }
  0x8c   : > { %p1801_p13 = pnand %p1800_p4, %p1794_p1 }
  0x8e   : > { %1804 = shalt.err (!%p1801_p13)
}
  0x8f   : > { %s1805_s12 = scalar_lea.vmem %s346_s30, 64  ;;  %s1954_s27 = smov [#allocation13]  }
  0x90   : > { %p1806_p10 = scmp.ne.s32.totalorder %s346_s30, %s1805_s12  ;;  %s1810_s25 = sshll.u32 %s1954_s27, 4  ;;  %s1811_s25 = int_to_ptr.vmem [resolvable:$false] %s1810_s25 }
  0x91   : > { %s1812_s11 = scalar_lea.vmem %s1811_s25, 128  ;;  %p1813_p5 = scmp.lt.s32.totalorder %s346_s30, %s1811_s25 }
  0x92   : > { %p1808_p7 = pnand %p1806_p10, %p2161_p6  ;;  %p1814_p11 = scmp.lt.s32.totalorder %s1812_s11, %s1805_s12 }
  0x94   : > { %p1809_p9 = pneg %p1808_p7  ;;  %p1815_p0 = por %p1814_p11, %p1813_p5 }
  0x96   : > { %p1816_p2 = pnand %p1815_p0, %p1809_p9 }
  0x98   : > { %1819 = shalt.err (!%p1816_p2)
}
  0x99   : > { %p2566_p3 = scmp.ne.s32.totalorder %s2561_s14, 0  ;;  %s356_s1 = scalar_lea.vmem [#allocation14], %s2131_s26 }
  0x9a   : > { %s365_s17 = sshll.u32 %s356_s1, 4  ;;  %s2567_s15 = sand.u32 1, %s1946_s19   ;;  %s366_s17 = int_to_ptr.vmem [resolvable:$true] %s365_s17 }
  0x9b   : > { %1567 = dma.hbm_to_vmem [thread:$0]  (!%p2566_p3), %s2198_s2, 64, %s346_s30, %s2155_s9  }
  0x9c   : > { %s353_s6 = scalar_lea.sflag [#allocation15], %s2567_s15  ;;  %s1820_s13 = scalar_lea.hbm %s2228_s21, 64 }
  0x9d   : > { %p1821_p0 = scmp.ne.s32.totalorder %s2228_s21, %s1820_s13  ;;  %s1825_s0 = scalar_lea.hbm %s2525_s4, 128 }
  0x9e   : > { %p1826_p12 = scmp.lt.u32.totalorder %s2228_s21, %s2525_s4  ;;  %p1827_p4 = scmp.lt.u32.totalorder %s1825_s0, %s1820_s13 }
  0x9f   : > { %p1823_p1 = pnand %p1821_p0, %p2161_p6  ;;  %p1829_p10 = scmp.lt.u32.totalorder %s1820_s13, %s2228_s21 }
  0xa0   : > { %p1828_p13 = por %p1827_p4, %p1826_p12 }
  0xa1   : > { %p1824_p8 = pneg %p1823_p1 }
  0xa2   : > { %p1830_p7 = por %p1829_p10, %p1828_p13 }
  0xa4   : > { %p1831_p9 = pnand %p1830_p7, %p1824_p8 }
  0xa6   : > { %1834 = shalt.err (!%p1831_p9)
}
  0xa7   : > { %s1835_s2 = scalar_lea.vmem %s366_s17, 64  ;;  %s1955_s26 = smov [#allocation14]  }
  0xa8   : > { %p1836_p5 = scmp.ne.s32.totalorder %s366_s17, %s1835_s2  ;;  %s1840_s9 = sshll.u32 %s1955_s26, 4  ;;  %s1841_s9 = int_to_ptr.vmem [resolvable:$false] %s1840_s9 }
  0xa9   : > { %s1842_s30 = scalar_lea.vmem %s1841_s9, 128  ;;  %p1843_p0 = scmp.lt.s32.totalorder %s366_s17, %s1841_s9 }
  0xaa   : > { %p1838_p11 = pnand %p1836_p5, %p2161_p6  ;;  %p1844_p1 = scmp.lt.s32.totalorder %s1842_s30, %s1835_s2 }
  0xac   : > { %p1839_p2 = pneg %p1838_p11  ;;  %p1845_p3 = por %p1844_p1, %p1843_p0 }
  0xae   : > { %p1846_p4 = pnand %p1845_p3, %p1839_p2 }
  0xb0   : > { %1849 = shalt.err (!%p1846_p4)
}
  0xb1   : > { %p2568_p12 = scmp.ne.s32.totalorder %s2561_s14, 0  ;;  %p2569_p8 = scmp.ne.s32.totalorder %s2554_s24, 0 }
  0xb2   : > { %s2271_s28 = sand.u32 (!%p2569_p8), 1, %s1930_s16   ;;  %p2570_p6 = scmp.ne.s32.totalorder (!%p2569_p8), %s2551_s22, 0 }
  0xb3   : > { %1570 = dma.hbm_to_vmem [thread:$0]  (!%p2568_p12), %s2228_s21, 64, %s366_s17, %s353_s6  }
  0xb4   : > { %374 = sbr.rel (%p2569_p8) target bundleno = 2267 (0x8db), region = 48  ;;  %s2274_s27 = sshll.u32 (!%p2569_p8), %s2271_s28, 2 }
  0xb5   : > { %s377_s25 = scalar_lea.sflag (!%p2569_p8), [#allocation9], %s2271_s28  ;;  %s380_s11 = scalar_lea.vmem (!%p2569_p8), [#allocation8], %s2274_s27 }
  0xbb   : > { %1905 = dma.done.wait (%p2570_p6), %s377_s25, 64  }
  0xbc   : > { %1907 = vsyncadd (%p2570_p6), %s377_s25, 4294967232  ;;  %s385_s24 = sand.u32 1, %s2064_s20   ;;  %s2284_s21 = scalar_lea.vmem [#allocation11], %s2274_s27 }
  0xbd   : > { %s386_s14 = scalar_lea.sflag [#allocation12], %s385_s24 }
  0xbe   : > { %1909 = dma.done.wait (%p2570_p6), %s386_s14, 128  }
  0xbf   : > { %1911 = vsyncadd (%p2570_p6), %s386_s14, 4294967168  ;;  %s2291_s1 = scalar_lea.vmem [#allocation13], %s2274_s27  ;;  %s404_s17 = scalar_lea.sflag [#allocation15], %s385_s24 }
  0xc0   : > { %s407_s15 = scalar_lea.vmem [#allocation14], %s2274_s27 }
  0xc1   : > { %1913 = dma.done.wait (%p2570_p6), %s404_s17, 64  }
  0xc2   : > { %1915 = vsyncadd (%p2570_p6), %s404_s17, 4294967232  ;;  %p2571_p3 = scmp.eq.s32.totalorder %s2064_s20, 0 }
  0xc4   : > { %1917 = dma.done.wait (%p2571_p3), [#allocation15], 256   ;;  %p2572_p13 = pmov %p2571_p3 }
  0xc5   : > { %s1426_s6 = sshll.u32 %s2271_s28, 3  ;;  %vm527_vm0 = vcmask 31744   ;;  %s533_s13 = sld [smem:[#allocation7 + %s1938_s18]]  ;;  %v1956_v0 = vmov 0.0   ;;  %v1957_v1 = vmov -inf   ;;  %vm479_vm1 = vcmask 261120  }
  0xc6   : > { %1919 = vsyncadd (%p2572_p13), [#allocation15], 4294967040  ;;  %1476 = vmatprep.subr.bf16.mxu0 %v1956_v0  ;;  %528 = vst.msk [vmem:[#allocation4] sm:$0xff] %vm527_vm0, %v1957_v1  ;;  %vm1958_vm2 = vmmov 0   ;;  %v1650_v2 = vld [vmem:[%s2526_s5] sm:$0xff]   ;;  %v1651_v3 = vld [vmem:[%s2526_s5 + $0x8] sm:$0xff]  }
  0xc7   : > { %529 = vst.msk [vmem:[#allocation5] sm:$0xff] %vm527_vm0, %v1956_v0  ;;  %1480 = vmatprep.mubr.msk.bf16.mxu0 %vm1958_vm2, %v1956_v0  ;;  %1477 = vmatpush3.bf16.msra.mxu0 %v1650_v2  ;;  %v462_v4 = vld [vmem:[%s380_s11] sm:$0xf]  ;;  %vm525_vm3 = vcmask 257024   ;;  %s2320_s0 = scalar_lea.vmem [#allocation17], %s1426_s6 }
  0xc8   : > { %530 = vst.msk [vmem:[#allocation3] sm:$0xff] %vm479_vm1, %v1956_v0  ;;  %1478 = vmatprep.subr.bf16.mxu0 %v1956_v0 }
  0xcb   : > { %1479 = vmatpush3.bf16.msra.mxu0 %v1651_v3  ;;  %p1430_p10 = scmp.eq.s32.totalorder %s533_s13, 0 }
  0xcc   : > { %v541_v11 = vld [vmem:[%s2284_s21] sm:$0xf] (!%p1430_p10)  ;;  %vm543_vm4 = vcmask (!%p1430_p10), 64512   ;;  %v1959_v12 = vmov (!%p1430_p10), 0.0   ;;  %vm1960_vm5 = vmmov (!%p1430_p10), 0   ;;  %v1961_v23 = vmov (!%p1430_p10), 0  }
  0xcd   : > { %1484 = vmatprep.subr.bf16.mxu0 (!%p1430_p10), %v1959_v12  ;;  %v548_v13 = vsel (!%p1430_p10), %vm543_vm4, %v541_v11, 0  ;;  %1490 = vmatprep.subr.bf16.mxu1 (!%p1430_p10), %v1959_v12  ;;  %v538_v15 = vld [vmem:[%s407_s15] sm:$0xf] (!%p1430_p10)  ;;  %v1661_v24 = vld [vmem:[%s2284_s21] ss:$0 sps:$4 sm:$0xff] (!%p1430_p10)   ;;  %s1962_s8 = smov (!%p1430_p10), 120  }
  0xce   : > { %1481 = vmatmul.mubr.msk.bf16.vlgmr.msra.gmra.mrb[0].mxu0 %vm479_vm1, %v462_v4  ;;  %1492 = vmatprep.mubr.msk.bf16.mxu1 (!%p1430_p10), %vm1960_vm5, %v1959_v12  ;;  %v2336_v16 = vunpack.c.l.bf16 (!%p1430_p10), %v538_v15  ;;  %v1662_v26 = vld [vmem:[%s2284_s21] ss:$0 sps:$4 sm:$0xff] (!%p1430_p10)   ;;  %s1963_s12 = smov (!%p1430_p10), 112   ;;  %s1964_s2 = smov (!%p1430_p10), 104   ;;  %v2350_v28 = vld [vmem:[#allocation4] sm:$0xff] (!%p1430_p10)  ;;  %vm612_vm6 = vcmask (!%p1430_p10), 7168  }
  0xcf   : > { %1486 = vmatprep.mubr.msk.bf16.mxu0 (!%p1430_p10), %vm1960_vm5, %v1959_v12  ;;  %1652 = vset.pattern.permute.xlu0 (!%p1430_p10), %v1961_v23  ;;  %v1663_v27 = vld [vmem:[%s2284_s21] ss:$0 sps:$4 sm:$0xff] (!%p1430_p10)   ;;  %v542_v32 = vld [vmem:[%s2291_s1] sm:$0xf] (!%p1430_p10)  ;;  %vm626_vm7 = vcmask (!%p1430_p10), 1043456   ;;  %vm752_vm8 = vcmask (!%p1430_p10), 15368  }
  0xd0   : > { %682 = vrot.lane.b32.xlu1 (!%p1430_p10), %v1661_v24, %s1962_s8  ;;  %v628_v33 = vsel (!%p1430_p10), %vm626_vm7, %v542_v32, 0  ;;  %v1664_v15 = vld [vmem:[%s2291_s1] ss:$0 sps:$4 sm:$0xff] (!%p1430_p10)   ;;  %vm898_vm9 = vcmask (!%p1430_p10), 23568   ;;  %vm1044_vm10 = vcmask (!%p1430_p10), 31768   ;;  %s1968_s26 = smov (!%p1430_p10), 8  }
  0xd1   : > { %1491 = vmatpush3.bf16.msra.mxu1 (!%p1430_p10), %v628_v33  ;;  %s1969_s9 = smov (!%p1430_p10), 16   ;;  %s1970_s30 = smov (!%p1430_p10), 24   ;;  %vm819_vm11 = vcmask (!%p1430_p10), 130112   ;;  %vm965_vm12 = vcmask (!%p1430_p10), 195712   ;;  %vm1111_vm13 = vcmask (!%p1430_p10), 261312  }
  0xd2   : > { %1496 = vmatprep.subr.bf16.mxu1 (!%p1430_p10), %v1959_v12 }
  0xd4   : > { %1485 = vmatpush3.bf16.xpose.msra.mxu0 (!%p1430_p10), %v548_v13 }
  0xd5   : > { %1502 = vmatprep.subr.bf16.mxu0 (!%p1430_p10), %v1959_v12 }
 0x142   : > { %v683_v37 = vpop.permute.xlu1 (!%p1430_p10), %682 }
 0x143   : > { %v688_v40 = vsel (!%p1430_p10), %vm543_vm4, %v683_v37, 0 }
 0x1a0   : > { %537 = sbr.rel (%p1430_p10) target bundleno = 1855 (0x73f), region = 76 }
 0x1a1   : > { %v517_v5 = vpop.f32.mrb[0].mxu0 }
 0x1a2   : > { %v523_v6 = vmul.f32 0.35355338, %v517_v5  ;;  %v1482_v7 = vpop.f32.mrb[1].mxu0 }
 0x1a3   : > { %v520_v8 = vpop.f32.mrb[2].mxu0  ;;  %v1965_v7 = vmov (!%p1430_p10), 1  }
 0x1a4   : > { %v524_v9 = vpack.c.bf16 %v523_v6, %v523_v6  ;;  %v1483_v10 = vpop.f32.mrb[3].mxu0  ;;  %1653 = vset.pattern.permute.xlu1 (!%p1430_p10), %v1965_v7  ;;  %v1966_v8 = vmov (!%p1430_p10), 2  }
 0x1a6   : > { %526 = vst.msk [vmem:[#allocation2] sm:$0xf] %vm525_vm3, %v524_v9 }
 0x1ad   : > { %v540_v14 = vld [vmem:[#allocation2] sm:$0xf] }
 0x1ae   : > { %1487 = vmatmul.mubr.msk.bf16.vlgmr.msra.gmra.mrb[0].mxu0 %vm543_vm4, %v540_v14  ;;  %v1433_v25 = vcombine.low %v540_v14, %v540_v14 }
 0x1af   : > { %1504 = vmatprep.mubr.msk.bf16.mxu0 %vm1960_vm5, %v1959_v12 }
 0x1b0   : > { %677 = vrot.lane.b32.xlu1 %v1433_v25, %s1962_s8 }
 0x1b4   : > { %828 = vrot.lane.b32.xlu1 %v1662_v26, %s1963_s12 }
 0x1b8   : > { %823 = vrot.lane.b32.xlu1 %v1433_v25, %s1963_s12 }
 0x1bc   : > { %974 = vrot.lane.b32.xlu1 %v1663_v27, %s1964_s2  ;;  %v1665_v27 = vld [vmem:[%s2291_s1] ss:$0 sps:$4 sm:$0xff]  }
 0x1c0   : > { %969 = vrot.lane.b32.xlu1 %v1433_v25, %s1964_s2 }
 0x222   : > { %v678_v38 = vpop.permute.xlu1 %677 }
 0x226   : > { %v829_v42 = vpop.permute.xlu1 %828 }
 0x227   : > { %v834_v44 = vsel %vm543_vm4, %v829_v42, 0 }
 0x22a   : > { %v824_v43 = vpop.permute.xlu1 %823 }
 0x22e   : > { %v975_v45 = vpop.permute.xlu1 %974 }
 0x22f   : > { %v980_v46 = vsel %vm543_vm4, %v975_v45, 0 }
 0x232   : > { %v970_v47 = vpop.permute.xlu1 %969 }
 0x281   : > { %v584_v17 = vpop.f32.mrb[0].mxu0 }
 0x282   : > { %v585_v18 = vadd.f32 %v584_v17, %v2336_v16  ;;  %v1488_v19 = vpop.f32.mrb[1].mxu0  ;;  %v1967_v17 = vmov 3  }
 0x283   : > { %v587_v20 = vpop.f32.mrb[2].mxu0 }
 0x284   : > { %v1489_v21 = vpop.f32.mrb[3].mxu0  ;;  %v592_v22 = vsel %vm543_vm4, %v585_v18, -inf }
 0x285   : > { %593 = vmax.xlane.f32.xlu0 %v592_v22 }
 0x312   : > { %v594_v29 = vpop.xlane.xlu0 %593 }
 0x313   : > { %v2353_v30 = vmax.f32 %v2350_v28, %v594_v29 }
 0x315   : > { %v596_v31 = vsub.f32 %v2350_v28, %v2353_v30  ;;  %614 = vst.msk [vmem:[#allocation4] sm:$0xff] %vm612_vm6, %v2353_v30  ;;  %601 = vperm.xlu0 %1652, %v2353_v30  }
 0x317   : > { %v597_v13 = vmul.f32 1.442695, %v596_v31 }
 0x319   : > { %1654 = vset.pattern.permute.xlu0 %v1966_v8 }
 0x31c   : > { %v730_v10 = vld [vmem:[#allocation4] sm:$0xff] }
 0x394   : > { %v602_v34 = vpop.permute.xlu0 %601 }
 0x395   : > { %v604_v35 = vsub.f32 %v585_v18, %v602_v34 }
 0x397   : > { %v605_v36 = vmul.f32 1.442695, %v604_v35 }
 0x399   : > { %1667 = vpow2.f32 %v605_v36 }
 0x39a   : > { %1669 = vpow2.f32 %v597_v13 }
 0x3a3   : > { %v2363_v39 = vpop.eup %1667 }
 0x3a4   : > { %v622_v41 = vpack.c.bf16 %v2363_v39, %v2363_v39  ;;  %v2407_v21 = vpop.eup %1669  ;;  %v608_v28 = vsel %vm543_vm4, %v2363_v39, 0.0  ;;  %v615_v39 = vld [vmem:[#allocation3] sm:$0xff] }
 0x3a6   : > { %1493 = vmatmul.mubr.msk.bf16.vlgmr.msra.gmra.mrb[0].mxu1 %vm543_vm4, %v622_v41 }
 0x3a7   : > { %1497 = vmatpush3.bf16.xpose.msra.mxu1 %v688_v40  ;;  %1498 = vmatprep.mubr.msk.bf16.mxu1 %vm1960_vm5, %v1959_v12 }
 0x3a8   : > { %1508 = vmatprep.subr.bf16.mxu1 %v1959_v12 }
 0x3ae   : > { %1499 = vmatmul.mubr.msk.bf16.vlgmr.msra.gmra.mrb[4].mxu1 %vm543_vm4, %v678_v38 }
 0x3af   : > { %1509 = vmatpush3.bf16.xpose.msra.mxu1 %v834_v44  ;;  %1510 = vmatprep.mubr.msk.bf16.mxu1 %vm1960_vm5, %v1959_v12 }
 0x3b0   : > { %1520 = vmatprep.subr.bf16.mxu1 %v1959_v12 }
 0x3b6   : > { %1511 = vmatmul.mubr.msk.bf16.vlgmr.msra.gmra.mrb[8].mxu1 %vm543_vm4, %v824_v43 }
 0x3b7   : > { %1521 = vmatpush3.bf16.xpose.msra.mxu1 %v980_v46  ;;  %1522 = vmatprep.mubr.msk.bf16.mxu1 %vm1960_vm5, %v1959_v12 }
 0x3be   : > { %1523 = vmatmul.mubr.msk.bf16.vlgmr.msra.gmra.mrb[12].mxu1 %vm543_vm4, %v970_v47 }
 0x479   : > { %v2382_v48 = vpop.f32.mrb[0].mxu1 }
 0x47a   : > { %v1494_v49 = vpop.f32.mrb[1].mxu1 }
 0x47b   : > { %v667_v50 = vpop.f32.mrb[2].mxu1 }
 0x47c   : > { %v1495_v51 = vpop.f32.mrb[3].mxu1 }
 0x481   : > { %v724_v52 = vpop.f32.mrb[4].mxu1 }
 0x482   : > { %v2385_v53 = vadd.f32 %v724_v52, %v2336_v16  ;;  %v1500_v54 = vpop.f32.mrb[5].mxu1 }
 0x483   : > { %v727_v55 = vpop.f32.mrb[6].mxu1 }
 0x484   : > { %v1501_v56 = vpop.f32.mrb[7].mxu1  ;;  %v732_v57 = vsel %vm543_vm4, %v2385_v53, -inf }
 0x485   : > { %733 = vmax.xlane.f32.xlu1 %v732_v57 }
 0x489   : > { %v870_v58 = vpop.f32.mrb[8].mxu1 }
 0x48a   : > { %v2390_v59 = vadd.f32 %v870_v58, %v2336_v16  ;;  %v1512_v60 = vpop.f32.mrb[9].mxu1 }
 0x48b   : > { %v873_v61 = vpop.f32.mrb[10].mxu1  ;;  %v591_v60 = vld [vmem:[#allocation5] sm:$0xff] }
 0x48c   : > { %v878_v62 = vsel %vm543_vm4, %v2390_v59, -inf  ;;  %v1513_v63 = vpop.f32.mrb[11].mxu1  ;;  %v607_v61 = vmul.f32 %v2407_v21, %v591_v60 }
 0x48d   : > { %879 = vmax.xlane.f32.xlu0 %v878_v62 }
 0x491   : > { %v1016_v1 = vpop.f32.mrb[12].mxu1 }
 0x492   : > { %v2395_v2 = vadd.f32 %v1016_v1, %v2336_v16  ;;  %v1524_v3 = vpop.f32.mrb[13].mxu1 }
 0x493   : > { %v1019_v4 = vpop.f32.mrb[14].mxu1 }
 0x494   : > { %v1024_v5 = vsel %vm543_vm4, %v2395_v2, -inf  ;;  %v1525_v6 = vpop.f32.mrb[15].mxu1 }
 0x495   : > { %1025 = vmax.xlane.f32.xlu1 %v1024_v5 }
 0x512   : > { %v734_v9 = vpop.xlane.xlu1 %733 }
 0x513   : > { %v735_v11 = vmax.f32 %v730_v10, %v734_v9 }
 0x515   : > { %v736_v14 = vsub.f32 %v730_v10, %v735_v11  ;;  %754 = vst.msk [vmem:[#allocation4] sm:$0xff] %vm752_vm8, %v735_v11  ;;  %741 = vperm.xlu1 %1653, %v735_v11  }
 0x517   : > { %v737_v29 = vmul.f32 1.442695, %v736_v14 }
 0x519   : > { %766 = vrot.lane.b32.xlu1 %v1664_v15, %s1962_s8  ;;  %1671 = vpow2.f32 %v737_v29 }
 0x51a   : > { %v880_v16 = vpop.xlane.xlu0 %879  ;;  %1655 = vset.pattern.permute.xlu1 %v1967_v17 }
 0x51c   : > { %v876_v18 = vld [vmem:[#allocation4] sm:$0xff] }
 0x51d   : > { %v881_v19 = vmax.f32 %v876_v18, %v880_v16 }
 0x51f   : > { %v882_v20 = vsub.f32 %v876_v18, %v881_v19  ;;  %900 = vst.msk [vmem:[#allocation4] sm:$0xff] %vm898_vm9, %v881_v19  ;;  %887 = vperm.xlu0 %1654, %v881_v19  }
 0x521   : > { %v883_v50 = vmul.f32 1.442695, %v882_v20 }
 0x522   : > { %v1026_v22 = vpop.xlane.xlu1 %1025 }
 0x523   : > { %1656 = vset.pattern.permute.xlu0 %v1961_v23  ;;  %v1666_v23 = vld [vmem:[%s2291_s1] ss:$0 sps:$4 sm:$0xff]   ;;  %v1672_v30 = vpop.eup %1671 }
 0x524   : > { %618 = vperm.xlu0 %1656, %v2407_v21  }
 0x526   : > { %v2411_v24 = vld [vmem:[#allocation4] sm:$0xff] }
 0x527   : > { %v2414_v25 = vmax.f32 %v2411_v24, %v1026_v22 }
 0x528   : > { %1658 = vset.pattern.permute.xlu0 %v1966_v8 }
 0x529   : > { %v1028_v26 = vsub.f32 %v2411_v24, %v2414_v25  ;;  %1046 = vst.msk [vmem:[#allocation4] sm:$0xff] %vm1044_vm10, %v2414_v25  ;;  %1033 = vperm.xlu1 %1655, %v2414_v25  }
 0x52b   : > { %v1029_v18 = vmul.f32 1.442695, %v1028_v26 }
 0x52d   : > { %912 = vrot.lane.b32.xlu1 %v1665_v27, %s1963_s12 }
 0x52e   : > { %1657 = vset.pattern.permute.xlu1 %v1965_v7 }
 0x531   : > { %1058 = vrot.lane.b32.xlu1 %v1666_v23, %s1964_s2 }
 0x555   : > { %609 = vadd.xlane.f32.xlu1 %v608_v28 }
 0x566   : > { %758 = vperm.xlu1 %1657, %v1672_v30  }
 0x56a   : > { %1659 = vset.pattern.permute.xlu1 %v1967_v17 }
 0x594   : > { %v742_v31 = vpop.permute.xlu1 %741 }
 0x595   : > { %v744_v32 = vsub.f32 %v2385_v53, %v742_v31 }
 0x597   : > { %v745_v33 = vmul.f32 1.442695, %v744_v32 }
 0x598   : > { %v767_v34 = vpop.permute.xlu1 %766 }
 0x599   : > { %1673 = vpow2.f32 %v745_v33  ;;  %v772_v35 = vsel %vm626_vm7, %v767_v34, 0 }
 0x59a   : > { %1503 = vmatpush3.bf16.msra.mxu0 %v772_v35 }
 0x59b   : > { %1514 = vmatprep.subr.bf16.mxu0 %v1959_v12 }
 0x59e   : > { %v888_v36 = vpop.permute.xlu0 %887 }
 0x59f   : > { %v890_v37 = vsub.f32 %v2390_v59, %v888_v36 }
 0x5a1   : > { %v891_v38 = vmul.f32 1.442695, %v890_v37 }
 0x5a3   : > { %v1674_v40 = vpop.eup %1673  ;;  %1675 = vpow2.f32 %v891_v38  ;;  %v619_v41 = vpop.permute.xlu0 %618 }
 0x5a4   : > { %v621_v42 = vmul.f32 %v619_v41, %v615_v39  ;;  %v748_v43 = vsel %vm543_vm4, %v1674_v40, 0.0  ;;  %v762_v44 = vpack.c.bf16 %v1674_v40, %v1674_v40 }
 0x5a5   : > { %749 = vadd.xlane.f32.xlu0 %v748_v43 }
 0x5a6   : > { %v670_v45 = vadd.f32 %v2382_v48, %v621_v42  ;;  %1505 = vmatmul.mubr.msk.bf16.vlgmr.msra.gmra.mrb[4].mxu0 %vm543_vm4, %v762_v44 }
 0x5a7   : > { %1516 = vmatprep.mubr.msk.bf16.mxu0 %vm1960_vm5, %v1959_v12 }
 0x5a8   : > { %671 = vst.msk [vmem:[#allocation3] sm:$0xff] %vm543_vm4, %v670_v45  ;;  %v1034_v46 = vpop.permute.xlu1 %1033 }
 0x5a9   : > { %v1036_v47 = vsub.f32 %v2395_v2, %v1034_v46 }
 0x5ab   : > { %v1037_v49 = vmul.f32 1.442695, %v1036_v47 }
 0x5ac   : > { %v913_v51 = vpop.permute.xlu1 %912 }
 0x5ad   : > { %v1676_v52 = vpop.eup %1675  ;;  %1677 = vpow2.f32 %v1037_v49  ;;  %v918_v53 = vsel %vm626_vm7, %v913_v51, 0 }
 0x5ae   : > { %1515 = vmatpush3.bf16.msra.mxu0 %v918_v53  ;;  %v908_v54 = vpack.c.bf16 %v1676_v52, %v1676_v52  ;;  %1679 = vpow2.f32 %v883_v50 }
 0x5af   : > { %1526 = vmatprep.subr.bf16.mxu0 %v1959_v12  ;;  %1681 = vpow2.f32 %v1029_v18  ;;  %v755_v21 = vld [vmem:[#allocation3] sm:$0xff] }
 0x5b0   : > { %v1059_v48 = vpop.permute.xlu1 %1058 }
 0x5b1   : > { %1517 = vmatmul.mubr.msk.bf16.vlgmr.msra.gmra.mrb[8].mxu0 %vm543_vm4, %v908_v54  ;;  %v1064_v55 = vsel %vm626_vm7, %v1059_v48, 0 }
 0x5b2   : > { %1527 = vmatpush3.bf16.msra.mxu0 %v1064_v55  ;;  %1528 = vmatprep.mubr.msk.bf16.mxu0 %vm1960_vm5, %v1959_v12 }
 0x5b7   : > { %v1678_v56 = vpop.eup %1677 }
 0x5b8   : > { %v1054_v57 = vpack.c.bf16 %v1678_v56, %v1678_v56  ;;  %v1680_v58 = vpop.eup %1679  ;;  %v1040_v59 = vsel %vm543_vm4, %v1678_v56, 0.0 }
 0x5b9   : > { %v1682_v19 = vpop.eup %1681 }
 0x5ba   : > { %1529 = vmatmul.mubr.msk.bf16.vlgmr.msra.gmra.mrb[12].mxu0 %vm543_vm4, %v1054_v57 }
 0x5bb   : > { %904 = vperm.xlu0 %1658, %v1680_v58  }
 0x5bf   : > { %1660 = vset.pattern.permute.xlu0 %v1967_v17  ;;  %v894_v17 = vsel %vm543_vm4, %v1676_v52, 0.0 }
 0x5da   : > { %1041 = vadd.xlane.f32.xlu0 %v1040_v59 }
 0x5e2   : > { %v610_v62 = vpop.xlane.xlu1 %609 }
 0x5e3   : > { %v611_v63 = vadd.f32 %v610_v62, %v607_v61 }
 0x5e5   : > { %613 = vst.msk [vmem:[#allocation5] sm:$0xff] %vm612_vm6, %v611_v63 }
 0x5e6   : > { %v759_v20 = vpop.permute.xlu1 %758 }
 0x5e7   : > { %v761_v22 = vmul.f32 %v759_v20, %v755_v21 }
 0x5ec   : > { %v731_v1 = vld [vmem:[#allocation5] sm:$0xff] }
 0x5ed   : > { %v747_v12 = vmul.f32 %v1672_v30, %v731_v1 }
 0x632   : > { %v750_v2 = vpop.xlane.xlu0 %749 }
 0x633   : > { %v751_v3 = vadd.f32 %v750_v2, %v747_v12 }
 0x635   : > { %753 = vst.msk [vmem:[#allocation5] sm:$0xff] %vm752_vm8, %v751_v3 }
 0x63a   : > { %v905_v25 = vpop.permute.xlu0 %904 }
 0x63c   : > { %v877_v28 = vld [vmem:[#allocation5] sm:$0xff] }
 0x63d   : > { %v893_v29 = vmul.f32 %v1680_v58, %v877_v28 }
 0x667   : > { %v1042_v37 = vpop.xlane.xlu0 %1041 }
 0x679   : > { %v808_v4 = vpop.f32.mrb[4].mxu0 }
 0x67a   : > { %v1506_v5 = vpop.f32.mrb[5].mxu0  ;;  %815 = vrot.lane.b32.xlu1 %v808_v4, %s1968_s26 }
 0x67b   : > { %v811_v6 = vpop.f32.mrb[6].mxu0 }
 0x67c   : > { %v1507_v7 = vpop.f32.mrb[7].mxu0 }
 0x684   : > { %v954_v8 = vpop.f32.mrb[8].mxu0 }
 0x685   : > { %v1518_v9 = vpop.f32.mrb[9].mxu0 }
 0x686   : > { %v957_v10 = vpop.f32.mrb[10].mxu0 }
 0x687   : > { %v1519_v11 = vpop.f32.mrb[11].mxu0 }
 0x68d   : > { %v1100_v13 = vpop.f32.mrb[12].mxu0 }
 0x68e   : > { %v1530_v14 = vpop.f32.mrb[13].mxu0 }
 0x68f   : > { %v1103_v15 = vpop.f32.mrb[14].mxu0 }
 0x690   : > { %v1531_v16 = vpop.f32.mrb[15].mxu0 }
 0x69e   : > { %895 = vadd.xlane.f32.xlu1 %v894_v17 }
 0x6af   : > { %961 = vrot.lane.b32.xlu1 %v954_v8, %s1969_s9 }
 0x6b3   : > { %1050 = vperm.xlu1 %1659, %v1682_v19  }
 0x6b7   : > { %1107 = vrot.lane.b32.xlu1 %v1100_v13, %s1970_s30 }
 0x6ec   : > { %v816_v27 = vpop.permute.xlu1 %815 }
 0x6ed   : > { %v818_v23 = vadd.f32 %v816_v27, %v761_v22 }
 0x6ef   : > { %820 = vst.msk [vmem:[#allocation3] sm:$0xff] %vm819_vm11, %v818_v23 }
 0x6f6   : > { %v901_v31 = vld [vmem:[#allocation3] sm:$0xff] }
 0x6f7   : > { %v907_v26 = vmul.f32 %v905_v25, %v901_v31 }
 0x72b   : > { %v896_v30 = vpop.xlane.xlu1 %895 }
 0x72c   : > { %v897_v24 = vadd.f32 %v896_v30, %v893_v29 }
 0x72e   : > { %899 = vst.msk [vmem:[#allocation5] sm:$0xff] %vm898_vm9, %v897_v24 }
 0x72f   : > { %v962_v32 = vpop.permute.xlu1 %961 }
 0x730   : > { %v964_v33 = vadd.f32 %v962_v32, %v907_v26 }
 0x732   : > { %966 = vst.msk [vmem:[#allocation3] sm:$0xff] %vm965_vm12, %v964_v33 }
 0x733   : > { %v1051_v35 = vpop.permute.xlu1 %1050 }
 0x735   : > { %v1023_v34 = vld [vmem:[#allocation5] sm:$0xff] }
 0x736   : > { %v1039_v36 = vmul.f32 %v1682_v19, %v1023_v34 }
 0x737   : > { %v1108_v41 = vpop.permute.xlu1 %1107 }
 0x738   : > { %v1043_v38 = vadd.f32 %v1042_v37, %v1039_v36 }
 0x739   : > { %v1047_v39 = vld [vmem:[#allocation3] sm:$0xff] }
 0x73a   : > { %1045 = vst.msk [vmem:[#allocation5] sm:$0xff] %vm1044_vm10, %v1043_v38  ;;  %v1053_v40 = vmul.f32 %v1051_v35, %v1047_v39 }
 0x73c   : > { %v1110_v42 = vadd.f32 %v1108_v41, %v1053_v40 }
 0x73e   : > { %1112 = vst.msk [vmem:[#allocation3] sm:$0xff] %vm1111_vm13, %v1110_v42 }
 0x73f PF: > { %1532 = vmatprep.subr.bf16.mxu0 %v1956_v0  ;;  %1536 = vmatprep.mubr.msk.bf16.mxu0 %vm1958_vm2, %v1956_v0  ;;  %v1971_v44 = vmov 0   ;;  %v1972_v45 = vmov 2   ;;  %v1973_v47 = vmov 1   ;;  %v1974_v49 = vmov 3   ;;  %v1688_v50 = vld [vmem:[#allocation16] sm:$0xff]   ;;  %v1689_v51 = vld [vmem:[#allocation16 + $0x8] sm:$0xff]  }
 0x740   : > { %1683 = vset.pattern.permute.xlu0 %v1971_v44  ;;  %1685 = vset.pattern.permute.xlu1 %v1972_v45  ;;  %vm1125_vm14 = vcmask 64512   ;;  %vm1136_vm15 = vcmask 130112   ;;  %vm1147_vm0 = vcmask 195712   ;;  %vm1158_vm2 = vcmask 261312   ;;  %v1446_v1 = vld [vmem:[%s2528_s7] ss:$0 sm:$0xff] }
 0x741   : > { %v1117_v43 = vld [vmem:[#allocation5] sm:$0xff]  ;;  %1533 = vmatpush3.bf16.msra.mxu0 %v1688_v50  ;;  %s1451_s11 = sshll.u32 %s1938_s18, 7  ;;  %s1245_s24 = sshll.u32 %s2320_s0, 4  ;;  %s2472_s24 = int_to_ptr.vmem [resolvable:$true] %s1245_s24 }
 0x742   : > { %1690 = vrcp.f32 %v1117_v43  ;;  %1534 = vmatprep.subr.bf16.mxu0 %v1956_v0  ;;  %s2573_s1 = sld [smem:[#allocation33_spill]]  ;;  %s1231_s15 = scalar_lea.sflag [#allocation10], %s2271_s28 }
 0x743   : > { %s1850_s18 = scalar_lea.vmem %s2472_s24, 128  ;;  %p2574_p9 = scmp.ne.s32.totalorder %s2559_s10, 0 }
 0x744   : > { %p1851_p7 = scmp.ne.s32.totalorder %s2472_s24, %s1850_s18  ;;  %s1975_s6 = smov [#allocation17]  }
 0x745   : > { %1535 = vmatpush3.bf16.msra.mxu0 %v1689_v51  ;;  %v1116_v52 = vld [vmem:[#allocation3] sm:$0xff]  ;;  %s1854_s13 = sshll.u32 %s1975_s6, 4  ;;  %s1855_s13 = int_to_ptr.vmem [resolvable:$false] %s1854_s13 }
 0x746   : > { %p1852_p5 = pnand %p1851_p7, %p2574_p9  ;;  %s1856_s20 = scalar_lea.vmem %s1855_s13, 256 }
 0x747   : > { %p1857_p2 = scmp.lt.s32.totalorder %s2472_s24, %s1855_s13  ;;  %p1858_p0 = scmp.lt.s32.totalorder %s1856_s20, %s1850_s18 }
 0x748   : > { %s2470_s17 = scalar_lea.hbm %s2573_s1, %s1451_s11  ;;  %p1853_p11 = pneg %p1852_p5 }
 0x749   : > { %p1859_p1 = por %p1858_p0, %p1857_p2 }
 0x74b   : > { %p1860_p4 = pnand %p1859_p1, %p1853_p11 }
 0x74c   : > { %v1691_v46 = vpop.eup %1690 }
 0x74d   : > { %1121 = vperm.xlu0 %1683, %v1691_v46   ;;  %1143 = vperm.xlu1 %1685, %v1691_v46  }
 0x751   : > { %1684 = vset.pattern.permute.xlu0 %v1973_v47  ;;  %1686 = vset.pattern.permute.xlu1 %v1974_v49 }
 0x752   : > { %1132 = vperm.xlu0 %1684, %v1691_v46   ;;  %1154 = vperm.xlu1 %1686, %v1691_v46  }
 0x756   : > { %1687 = vset.pattern.permute.xlu0 %v1974_v49 }
 0x7cc   : > { %v1122_v53 = vpop.permute.xlu0 %1121  ;;  %v1144_v57 = vpop.permute.xlu1 %1143 }
 0x7cd   : > { %v1124_v54 = vmul.f32 %v1122_v53, %v1116_v52 }
 0x7cf   : > { %1126 = vst.msk [vmem:[#allocation3] sm:$0xff] %vm1125_vm14, %v1124_v54 }
 0x7d1   : > { %v1133_v48 = vpop.permute.xlu0 %1132  ;;  %v1155_v60 = vpop.permute.xlu1 %1154 }
 0x7d6   : > { %v1127_v55 = vld [vmem:[#allocation3] sm:$0xff] }
 0x7d7   : > { %v1135_v56 = vmul.f32 %v1133_v48, %v1127_v55 }
 0x7d9   : > { %1137 = vst.msk [vmem:[#allocation3] sm:$0xff] %vm1136_vm15, %v1135_v56 }
 0x7e0   : > { %v1138_v58 = vld [vmem:[#allocation3] sm:$0xff] }
 0x7e1   : > { %v1146_v59 = vmul.f32 %v1144_v57, %v1138_v58 }
 0x7e3   : > { %1148 = vst.msk [vmem:[#allocation3] sm:$0xff] %vm1147_vm0, %v1146_v59 }
 0x7ea   : > { %v1149_v0 = vld [vmem:[#allocation3] sm:$0xff] }
 0x7eb   : > { %v1157_v61 = vmul.f32 %v1155_v60, %v1149_v0 }
 0x7ed   : > { %1159 = vst.msk [vmem:[#allocation3] sm:$0xff] %vm1158_vm2, %v1157_v61 }
 0x7f4   : > { %v1160_v62 = vld [vmem:[#allocation3] sm:$0xff] }
 0x7f5   : > { %v1161_v63 = vpack.c.bf16 %v1160_v62, %v1160_v62 }
 0x7f7   : > { %1537 = vmatmul.mubr.msk.bf16.vlgmr.msra.gmra.mrb[0].mxu0 %vm479_vm1, %v1161_v63 }
 0x8ca   : > { %v1223_v12 = vpop.f32.mrb[0].mxu0 }
 0x8cb   : > { %v1224_v2 = vadd.f32 %v1446_v1, %v1223_v12  ;;  %v1538_v3 = vpop.f32.mrb[1].mxu0 }
 0x8cc   : > { %v1226_v4 = vpop.f32.mrb[2].mxu0 }
 0x8cd   : > { %1229 = vst.msk [vmem:[%s2320_s0] sm:$0xff] %vm479_vm1, %v1224_v2  ;;  %v1539_v5 = vpop.f32.mrb[3].mxu0 }
 0x8ce   : > { %1863 = shalt.err (!%p1860_p4)
}
 0x8cf   : > { %s1864_s28 = scalar_lea.hbm %s2470_s17, 128  ;;  %s1868_s29 = scalar_lea.hbm %s2573_s1, 256 }
 0x8d0   : > { %p1865_p12 = scmp.ne.s32.totalorder %s2470_s17, %s1864_s28  ;;  %p1869_p3 = scmp.lt.u32.totalorder %s2470_s17, %s2573_s1 }
 0x8d1   : > { %p1870_p13 = scmp.lt.u32.totalorder %s1868_s29, %s1864_s28  ;;  %p1872_p7 = scmp.lt.u32.totalorder %s1864_s28, %s2470_s17 }
 0x8d2   : > { %p1866_p8 = pnand %p1865_p12, %p2574_p9 }
 0x8d3   : > { %p1871_p10 = por %p1870_p13, %p1869_p3 }
 0x8d4   : > { %p1867_p6 = pneg %p1866_p8 }
 0x8d5   : > { %p1873_p5 = por %p1872_p7, %p1871_p10 }
 0x8d7   : > { %p1874_p11 = pnand %p1873_p5, %p1867_p6 }
 0x8d9   : > { %1877 = shalt.err (!%p1874_p11)
}
 0x8da   : > { %1552 = dma.vmem_to_hbm [thread:$0]  (%p2574_p9), %s2472_s24, 128, %s2470_s17, %s1231_s15  }
 0x8db PF: > { %s2575_s12 = sld [smem:[#allocation24_spill]]  ;;  %s2576_s2 = sld [smem:[#allocation27_spill]] }
 0x8dc   : > { %p2578_p0 = scmp.ge.s32.totalorder %s1946_s19, 2 }
 0x8e1   : > { %s1257_s26 = sand.u32 1, %s2575_s12   ;;  %p2577_p2 = scmp.ne.s32.totalorder %s2576_s2, 0 }
 0x8e2   : > { %s1258_s9 = scalar_lea.sflag [#allocation10], %s1257_s26 }
 0x8e3   : > { %p1572_p1 = pnand %p2578_p0, %p2577_p2 }
 0x8e5   : > { %1921 = dma.done.wait (!%p1572_p1), %s1258_s9, 128  }
 0x8e6   : > { %1923 = vsyncadd (!%p1572_p1), %s1258_s9, 4294967168  ;;  %s34_s19 = sadd.s32 1, %s1946_s19   ;;  %s2579_s30 = sld [smem:[#allocation25_spill]] }
 0x8e7   : > { %p31_p4 = scmp.ge.s32.totalorder %s34_s19, 4   ;;  %s2580_s17 = sld [smem:[#allocation29_spill]] }
 0x8e8   : > { %s2581_s18 = sld [smem:[#allocation26_spill]]  ;;  %s2582_s0 = sld [smem:[#allocation28_spill]] }
 0x8e9   : > { %s2583_s15 = smov %s1930_s16  ;;  %33 = sbr.rel (!%p31_p4) target bundleno = 23 (0x17), region = 146 }
 0x8ec   : > { %s2584_s16 = smov %s2579_s30 }
 0x8f0   :  { %1263 = vsyncpa [#allocation9], 1 }
 0x8f1   :  { %1265 = vsyncpa [#allocation9 + $0x1], 1 }
 0x8f2   :  { %1266 = vsyncpa [#allocation12], 1 }
 0x8f3   :  { %1268 = vsyncpa [#allocation12 + $0x1], 1 }
 0x8f4   :  { %1269 = vsyncpa [#allocation15], 1 }
 0x8f5   :  { %1271 = vsyncpa [#allocation15 + $0x1], 1 }
 0x8f6   :  { %1272 = vsyncpa [#allocation10], 1 }
 0x8f7   :  { %1274 = vsyncpa [#allocation10 + $0x1], 1 }

</bundles_post_ra>
